<compile_context>
chip_gen: v7x
topology: tpu7x:2x2x1
jax: 0.10.0
libtpu: 0.0.40
codegen_flags: <defaults>
</compile_context>

<pallas_src>
import jax
import jax.numpy as jnp
from jax.experimental import pallas as pl
from jax.experimental.pallas import tpu as pltpu

DIM_OBS = 512
DIM_GOAL = 512
DIM_IN = DIM_OBS + DIM_GOAL      # 1024
HIDDEN = 512
DIM_OUT = 7
OUT_PAD = 128                    # lane width of W3 / in-kernel result (MXU minimum)

MAX_SINGLE_TILE = 512            # single grid step up to this many rows
TARGET_TILE_B = 512              # per-step batch tile target for larger B


def _round_up(x, m):
    return ((x + m - 1) // m) * m


def _choose_tiling(B):
    """Return (Bp, tile_b) with Bp a multiple of tile_b, tile_b a multiple of 8,
    and at most tile-alignment (< 8 rows/step) of wasted padding."""
    bp8 = _round_up(B, 8)
    if bp8 <= MAX_SINGLE_TILE:
        return bp8, bp8                      # one grid step, no tile-boundary waste
    n_steps = -(-bp8 // TARGET_TILE_B)       # ceil
    tile_b = _round_up(-(-bp8 // n_steps), 8)
    return n_steps * tile_b, tile_b


def _mlp_kernel(obs_ref, goal_ref,
                w1a_ref, w1b_ref, b1_ref,
                w2_ref, b2_ref,
                w3_ref, b3_ref,
                out_ref):
    # Cast activations to bf16 in-kernel (no wrapper-side cast pass); weights are
    # already bf16; every dot accumulates in f32 on the MXU.
    obs = obs_ref[...].astype(jnp.bfloat16)
    goal = goal_ref[...].astype(jnp.bfloat16)

    # layer 1: concat(obs, goal) @ W1 + b1, ReLU  (concat folded into two matmuls;
    # the f32 add of the partials is VPU filler under MXU slack)
    h1 = jnp.dot(obs, w1a_ref[...], preferred_element_type=jnp.float32)
    h1 = h1 + jnp.dot(goal, w1b_ref[...], preferred_element_type=jnp.float32)
    h1 = jnp.maximum(h1 + b1_ref[...], 0.0).astype(jnp.bfloat16)

    # layer 2: Linear + ReLU
    h2 = jnp.dot(h1, w2_ref[...], preferred_element_type=jnp.float32)
    h2 = jnp.maximum(h2 + b2_ref[...], 0.0).astype(jnp.bfloat16)

    # layer 3: Linear on the 128-lane-padded W3 (MXU-friendly), then store only
    # the 7 real logit columns -> output array is [Bp, 7], no wrapper slice pass.
    out = jnp.dot(h2, w3_ref[...], preferred_element_type=jnp.float32) + b3_ref[...]
    out_ref[...] = out[:, :DIM_OUT].astype(out_ref.dtype)


def goal_policy_forward(obs, goal, params):
    """Pallas implementation of DiscreteStochasticGoalPolicy.forward.

    obs/goal may be f32 (module semantics) or bf16 (caller already halved the
    activation DMA); the kernel casts to bf16 after load either way.
    """
    B = obs.shape[0]
    w1a, w1b, b1, w2, b2, w3p, b3p = params

    Bp, tile_b = _choose_tiling(B)
    if Bp != B:
        # only pads up to the next multiple of 8 (+ <8 rows/step for huge B)
        obs = jnp.pad(obs, ((0, Bp - B), (0, 0)))
        goal = jnp.pad(goal, ((0, Bp - B), (0, 0)))

    grid = (Bp // tile_b,)

    act_spec = pl.BlockSpec((tile_b, DIM_OBS), lambda i: (i, 0))

    def pinned(shape):
        # Constant index_map -> same block every grid step -> fetched once,
        # stays VMEM-resident across the batch grid.
        return pl.BlockSpec(shape, lambda i: (0, 0))

    act_bytes = obs.dtype.itemsize
    flops = 2 * Bp * (DIM_IN * HIDDEN + HIDDEN * HIDDEN + HIDDEN * OUT_PAD)
    weight_bytes = 2 * (DIM_IN * HIDDEN + HIDDEN * HIDDEN + HIDDEN * OUT_PAD)  # bf16
    bias_bytes = 4 * (HIDDEN + HIDDEN + OUT_PAD)
    io_bytes = act_bytes * Bp * (DIM_OBS + DIM_GOAL) + 4 * Bp * DIM_OUT

    out = pl.pallas_call(
        _mlp_kernel,
        out_shape=jax.ShapeDtypeStruct((Bp, DIM_OUT), jnp.float32),
        grid_spec=pltpu.PrefetchScalarGridSpec(
            num_scalar_prefetch=0,
            grid=grid,
            in_specs=[
                act_spec,                          # obs tile  (caller dtype)
                act_spec,                          # goal tile (caller dtype)
                pinned((DIM_OBS, HIDDEN)),         # W1 obs-half   (bf16)
                pinned((DIM_GOAL, HIDDEN)),        # W1 goal-half  (bf16)
                pinned((1, HIDDEN)),               # b1            (f32)
                pinned((HIDDEN, HIDDEN)),          # W2            (bf16)
                pinned((1, HIDDEN)),               # b2            (f32)
                pinned((HIDDEN, OUT_PAD)),         # W3 padded     (bf16)
                pinned((1, OUT_PAD)),              # b3 padded     (f32)
            ],
            # full last dim (7) is a legal block width; avoids a padded slab +
            # wrapper slice pass.
            out_specs=pl.BlockSpec((tile_b, DIM_OUT), lambda i: (i, 0)),
        ),
        compiler_params=pltpu.CompilerParams(
            dimension_semantics=("parallel",),
            vmem_limit_bytes=32 * 1024 * 1024),    # lets v5e use the same tiles
        cost_estimate=pl.CostEstimate(
            flops=flops, transcendentals=0,
            bytes_accessed=weight_bytes + bias_bytes + io_bytes),
    )(obs, goal, w1a, w1b, b1, w2, b2, w3p, b3p)

    return out[:B] if Bp != B else out


def init_params(key):
    """Deterministic init matching PyTorch nn.Linear default (U[-1/sqrt(fan_in), 1/sqrt(fan_in)]).

    Weights are stored as [in, out] so the kernel computes x @ W.  Kernel-side
    weights are bf16 (halved DMA bytes, native MXU path); biases stay f32.
    """
    ks = jax.random.split(key, 6)

    def lin(kw, kb, fan_in, fan_out):
        bound = 1.0 / jnp.sqrt(jnp.float32(fan_in))
        w = jax.random.uniform(kw, (fan_in, fan_out), jnp.float32, -bound, bound)
        b = jax.random.uniform(kb, (1, fan_out), jnp.float32, -bound, bound)
        return w, b

    w1, b1 = lin(ks[0], ks[1], DIM_IN, HIDDEN)
    w2, b2 = lin(ks[2], ks[3], HIDDEN, HIDDEN)
    w3, b3 = lin(ks[4], ks[5], HIDDEN, DIM_OUT)

    # split W1 into obs / goal halves (concat folded into the kernel), cast to bf16
    w1a = w1[:DIM_OBS, :].astype(jnp.bfloat16)
    w1b = w1[DIM_OBS:, :].astype(jnp.bfloat16)
    w2b = w2.astype(jnp.bfloat16)
    # zero-pad last layer to a 128-lane slab for the MXU (store is narrowed in-kernel)
    w3p = jnp.zeros((HIDDEN, OUT_PAD), jnp.float32).at[:, :DIM_OUT].set(w3).astype(jnp.bfloat16)
    b3p = jnp.zeros((1, OUT_PAD), jnp.float32).at[:, :DIM_OUT].set(b3)

    params = (w1a, w1b, b1, w2b, b2, w3p, b3p)
    raw_params = (w1, b1, w2, b2, w3, b3)
    return params, raw_params


def reference_forward(obs, goal, raw_params):
    w1, b1, w2, b2, w3, b3 = raw_params
    c = jnp.concatenate([obs, goal], axis=1)
    h1 = jnp.maximum(c @ w1 + b1, 0.0)
    h2 = jnp.maximum(h1 @ w2 + b2, 0.0)
    return h2 @ w3 + b3


if __name__ == "__main__":
    key = jax.random.PRNGKey(0)
    k_obs, k_goal, k_params = jax.random.split(key, 3)
    params, raw_params = init_params(k_params)

    # --- small-batch path (B < 333 -> concat along dim=1 in the PyTorch module) ---
    B = 8
    obs = jax.random.normal(k_obs, (B, DIM_OBS), jnp.float32)
    goal = jax.random.normal(k_goal, (B, DIM_GOAL), jnp.float32)

    out = goal_policy_forward(obs, goal, params)
    out = jax.block_until_ready(out)
    ref = reference_forward(obs, goal, raw_params)
    assert out.shape == (B, DIM_OUT), out.shape
    # bf16 weights/activations with f32 accumulation -> loosened tolerance vs f32 reference
    assert jnp.allclose(out, ref, atol=5e-2, rtol=5e-2), "mismatch vs JAX reference (B=8)"

    # --- batch not a multiple of 8: pads only to 264 and runs a single grid step ---
    B2 = 260
    obs2 = jax.random.normal(jax.random.fold_in(k_obs, 1), (B2, DIM_OBS), jnp.float32)
    goal2 = jax.random.normal(jax.random.fold_in(k_goal, 1), (B2, DIM_GOAL), jnp.float32)
    out2 = jax.block_until_ready(goal_policy_forward(obs2, goal2, params))
    ref2 = reference_forward(obs2, goal2, raw_params)
    assert out2.shape == (B2, DIM_OUT), out2.shape
    assert jnp.allclose(out2, ref2, atol=5e-2, rtol=5e-2), "mismatch vs JAX reference (B=260)"

    # --- larger batch exercising the multi-step batch grid ---
    B3 = 520
    obs3 = jax.random.normal(jax.random.fold_in(k_obs, 2), (B3, DIM_OBS), jnp.float32)
    goal3 = jax.random.normal(jax.random.fold_in(k_goal, 2), (B3, DIM_GOAL), jnp.float32)
    out3 = jax.block_until_ready(goal_policy_forward(obs3, goal3, params))
    ref3 = reference_forward(obs3, goal3, raw_params)
    assert out3.shape == (B3, DIM_OUT), out3.shape
    assert jnp.allclose(out3, ref3, atol=5e-2, rtol=5e-2), "mismatch vs JAX reference (B=520)"

    print("KERNEL_OK")
</pallas_src>

<mosaic_0001>
module attributes {stable_mosaic.version = 11 : i64} {
  func.func @_mlp_kernel(%arg0: i32, %arg1: memref<8x512xf32, #tpu.memory_space<vmem>>, %arg2: memref<8x512xf32, #tpu.memory_space<vmem>>, %arg3: memref<512x512xbf16, #tpu.memory_space<vmem>>, %arg4: memref<512x512xbf16, #tpu.memory_space<vmem>>, %arg5: memref<1x512xf32, #tpu.memory_space<vmem>>, %arg6: memref<512x512xbf16, #tpu.memory_space<vmem>>, %arg7: memref<1x512xf32, #tpu.memory_space<vmem>>, %arg8: memref<512x128xbf16, #tpu.memory_space<vmem>>, %arg9: memref<1x128xf32, #tpu.memory_space<vmem>>, %arg10: memref<8x7xf32, #tpu.memory_space<vmem>>) attributes {dimension_semantics = [#tpu.dimension_semantics<parallel>], iteration_bounds = array<i64: 1>, scalar_prefetch = 0 : i64, scratch_operands = 0 : i64, tpu.core_type = #tpu.core_type<tc>, window_params = [{transform_indices = @transform_0, window_bounds = array<i64: 8, 512>}, {transform_indices = @transform_1, window_bounds = array<i64: 8, 512>}, {pipeline_mode = #tpu.pipeline_mode<synchronous>, transform_indices = @transform_2, window_bounds = array<i64: 512, 512>}, {pipeline_mode = #tpu.pipeline_mode<synchronous>, transform_indices = @transform_3, window_bounds = array<i64: 512, 512>}, {pipeline_mode = #tpu.pipeline_mode<synchronous>, transform_indices = @transform_4, window_bounds = array<i64: 1, 512>}, {pipeline_mode = #tpu.pipeline_mode<synchronous>, transform_indices = @transform_5, window_bounds = array<i64: 512, 512>}, {pipeline_mode = #tpu.pipeline_mode<synchronous>, transform_indices = @transform_6, window_bounds = array<i64: 1, 512>}, {pipeline_mode = #tpu.pipeline_mode<synchronous>, transform_indices = @transform_7, window_bounds = array<i64: 512, 128>}, {pipeline_mode = #tpu.pipeline_mode<synchronous>, transform_indices = @transform_8, window_bounds = array<i64: 1, 128>}, {transform_indices = @transform_9, window_bounds = array<i64: 8, 7>}]} {
    %c0 = arith.constant 0 : index
    %c0_0 = arith.constant 0 : index
    %0 = vector.load %arg1[%c0, %c0_0] : memref<8x512xf32, #tpu.memory_space<vmem>>, vector<8x512xf32>
    %1 = arith.truncf %0 : vector<8x512xf32> to vector<8x512xbf16>
    %c0_1 = arith.constant 0 : index
    %c0_2 = arith.constant 0 : index
    %2 = vector.load %arg2[%c0_1, %c0_2] : memref<8x512xf32, #tpu.memory_space<vmem>>, vector<8x512xf32>
    %3 = arith.truncf %2 : vector<8x512xf32> to vector<8x512xbf16>
    %c0_3 = arith.constant 0 : index
    %c0_4 = arith.constant 0 : index
    %4 = vector.load %arg3[%c0_3, %c0_4] : memref<512x512xbf16, #tpu.memory_space<vmem>>, vector<512x512xbf16>
    %cst = arith.constant dense<0.000000e+00> : vector<8x512xf32>
    %5 = tpu.matmul %1, %4, %cst {dimension_numbers = #tpu.dot_dimension_numbers<[1], [0], [0], [1], [0, 0, 1, 1], [], []>} : vector<8x512xbf16>, vector<512x512xbf16>, vector<8x512xf32> -> vector<8x512xf32>
    %c0_5 = arith.constant 0 : index
    %c0_6 = arith.constant 0 : index
    %6 = vector.load %arg4[%c0_5, %c0_6] : memref<512x512xbf16, #tpu.memory_space<vmem>>, vector<512x512xbf16>
    %cst_7 = arith.constant dense<0.000000e+00> : vector<8x512xf32>
    %7 = tpu.matmul %3, %6, %cst_7 {dimension_numbers = #tpu.dot_dimension_numbers<[1], [0], [0], [1], [0, 0, 1, 1], [], []>} : vector<8x512xbf16>, vector<512x512xbf16>, vector<8x512xf32> -> vector<8x512xf32>
    %8 = arith.addf %5, %7 : vector<8x512xf32>
    %c0_8 = arith.constant 0 : index
    %c0_9 = arith.constant 0 : index
    %9 = vector.load %arg5[%c0_8, %c0_9] : memref<1x512xf32, #tpu.memory_space<vmem>>, vector<1x512xf32>
    %10 = vector.broadcast %9 : vector<1x512xf32> to vector<8x512xf32>
    %11 = arith.addf %8, %10 : vector<8x512xf32>
    %cst_10 = arith.constant 0.000000e+00 : f32
    %12 = vector.broadcast %cst_10 : f32 to vector<8x512xf32>
    %13 = arith.maximumf %11, %12 : vector<8x512xf32>
    %14 = arith.truncf %13 : vector<8x512xf32> to vector<8x512xbf16>
    %c0_11 = arith.constant 0 : index
    %c0_12 = arith.constant 0 : index
    %15 = vector.load %arg6[%c0_11, %c0_12] : memref<512x512xbf16, #tpu.memory_space<vmem>>, vector<512x512xbf16>
    %cst_13 = arith.constant dense<0.000000e+00> : vector<8x512xf32>
    %16 = tpu.matmul %14, %15, %cst_13 {dimension_numbers = #tpu.dot_dimension_numbers<[1], [0], [0], [1], [0, 0, 1, 1], [], []>} : vector<8x512xbf16>, vector<512x512xbf16>, vector<8x512xf32> -> vector<8x512xf32>
    %c0_14 = arith.constant 0 : index
    %c0_15 = arith.constant 0 : index
    %17 = vector.load %arg7[%c0_14, %c0_15] : memref<1x512xf32, #tpu.memory_space<vmem>>, vector<1x512xf32>
    %18 = vector.broadcast %17 : vector<1x512xf32> to vector<8x512xf32>
    %19 = arith.addf %16, %18 : vector<8x512xf32>
    %cst_16 = arith.constant 0.000000e+00 : f32
    %20 = vector.broadcast %cst_16 : f32 to vector<8x512xf32>
    %21 = arith.maximumf %19, %20 : vector<8x512xf32>
    %22 = arith.truncf %21 : vector<8x512xf32> to vector<8x512xbf16>
    %c0_17 = arith.constant 0 : index
    %c0_18 = arith.constant 0 : index
    %23 = vector.load %arg8[%c0_17, %c0_18] : memref<512x128xbf16, #tpu.memory_space<vmem>>, vector<512x128xbf16>
    %cst_19 = arith.constant dense<0.000000e+00> : vector<8x128xf32>
    %24 = tpu.matmul %22, %23, %cst_19 {dimension_numbers = #tpu.dot_dimension_numbers<[1], [0], [0], [1], [0, 0, 1, 1], [], []>} : vector<8x512xbf16>, vector<512x128xbf16>, vector<8x128xf32> -> vector<8x128xf32>
    %c0_20 = arith.constant 0 : index
    %c0_21 = arith.constant 0 : index
    %25 = vector.load %arg9[%c0_20, %c0_21] : memref<1x128xf32, #tpu.memory_space<vmem>>, vector<1x128xf32>
    %26 = vector.broadcast %25 : vector<1x128xf32> to vector<8x128xf32>
    %27 = arith.addf %24, %26 : vector<8x128xf32>
    %28 = vector.extract_strided_slice %27 {offsets = [0, 0], sizes = [8, 7], strides = [1, 1]} : vector<8x128xf32> to vector<8x7xf32>
    %c0_22 = arith.constant 0 : index
    %c0_23 = arith.constant 0 : index
    %29 = vector.load %arg10[%c0_22, %c0_23] : memref<8x7xf32, #tpu.memory_space<vmem>>, vector<8x7xf32>
    tpu.vector_store %arg10[%c0_22, %c0_23], %28 {strides = array<i32>} : memref<8x7xf32, #tpu.memory_space<vmem>>, vector<8x7xf32>,
    return
  }
  func.func @transform_0(%arg0: i32) -> (i32, i32) {
    %c0_i32 = arith.constant 0 : i32
    %c0_i32_0 = arith.constant 0 : i32
    return %arg0, %c0_i32 : i32, i32
  }
  func.func @transform_1(%arg0: i32) -> (i32, i32) {
    %c0_i32 = arith.constant 0 : i32
    %c0_i32_0 = arith.constant 0 : i32
    return %arg0, %c0_i32 : i32, i32
  }
  func.func @transform_2(%arg0: i32) -> (i32, i32) {
    %c0_i32 = arith.constant 0 : i32
    %c0_i32_0 = arith.constant 0 : i32
    %c0_i32_1 = arith.constant 0 : i32
    return %c0_i32, %c0_i32_0 : i32, i32
  }
  func.func @transform_3(%arg0: i32) -> (i32, i32) {
    %c0_i32 = arith.constant 0 : i32
    %c0_i32_0 = arith.constant 0 : i32
    %c0_i32_1 = arith.constant 0 : i32
    return %c0_i32, %c0_i32_0 : i32, i32
  }
  func.func @transform_4(%arg0: i32) -> (i32, i32) {
    %c0_i32 = arith.constant 0 : i32
    %c0_i32_0 = arith.constant 0 : i32
    %c0_i32_1 = arith.constant 0 : i32
    return %c0_i32, %c0_i32_0 : i32, i32
  }
  func.func @transform_5(%arg0: i32) -> (i32, i32) {
    %c0_i32 = arith.constant 0 : i32
    %c0_i32_0 = arith.constant 0 : i32
    %c0_i32_1 = arith.constant 0 : i32
    return %c0_i32, %c0_i32_0 : i32, i32
  }
  func.func @transform_6(%arg0: i32) -> (i32, i32) {
    %c0_i32 = arith.constant 0 : i32
    %c0_i32_0 = arith.constant 0 : i32
    %c0_i32_1 = arith.constant 0 : i32
    return %c0_i32, %c0_i32_0 : i32, i32
  }
  func.func @transform_7(%arg0: i32) -> (i32, i32) {
    %c0_i32 = arith.constant 0 : i32
    %c0_i32_0 = arith.constant 0 : i32
    %c0_i32_1 = arith.constant 0 : i32
    return %c0_i32, %c0_i32_0 : i32, i32
  }
  func.func @transform_8(%arg0: i32) -> (i32, i32) {
    %c0_i32 = arith.constant 0 : i32
    %c0_i32_0 = arith.constant 0 : i32
    %c0_i32_1 = arith.constant 0 : i32
    return %c0_i32, %c0_i32_0 : i32, i32
  }
  func.func @transform_9(%arg0: i32) -> (i32, i32) {
    %c0_i32 = arith.constant 0 : i32
    %c0_i32_0 = arith.constant 0 : i32
    return %arg0, %c0_i32 : i32, i32
  }
}

</mosaic_0001>

<bundles_post_ra>
// kernel: tpu_custom_call.1
= control target key start
LH: loop header
LB: loop body
LE: loop exit
PB: predicated region body
PF: predicated region fallthrough
CT: control target
= control target key end

     0   :  { %14 = vsyncpa [#allocation3], 0  ;;  %s4838_s0 = inlined_call_operand.hbm [shape: f32[8,512], index: 0, kind: input, shape index: {}]   ;;  %s4839_s1 = inlined_call_operand.hbm [shape: f32[8,512], index: 1, kind: input, shape index: {}]   ;;  %s4840_s2 = inlined_call_operand.hbm [shape: bf16[512,512], index: 2, kind: input, shape index: {}]   ;;  %s4841_s3 = inlined_call_operand.hbm [shape: bf16[512,512], index: 3, kind: input, shape index: {}]   ;;  %s4842_s4 = inlined_call_operand.vmem [shape: f32[1,512], index: 4, kind: input, shape index: {}]   ;;  %s4843_s5 = inlined_call_operand.hbm [shape: bf16[512,512], index: 5, kind: input, shape index: {}]   ;;  %s4844_s6 = inlined_call_operand.vmem [shape: f32[1,512], index: 6, kind: input, shape index: {}]   ;;  %s4845_s7 = inlined_call_operand.hbm [shape: bf16[512,128], index: 7, kind: input, shape index: {}]   ;;  %s4846_s8 = inlined_call_operand.vmem [shape: f32[1,128], index: 8, kind: input, shape index: {}]   ;;  %s4847_s9 = inlined_call_operand.hbm [shape: f32[8,7], index: 9, kind: output, shape index: {}]  }
   0x1   :  { %15 = vsyncpa [#allocation6], 0 }
   0x2   :  { %16 = vsyncpa [#allocation9], 0 }
   0x3   :  { %17 = vsyncpa [#allocation12], 0 }
   0x4   :  { %18 = vsyncpa [#allocation4], 0  ;;  %s4607_s30 = smov [#allocation5]   ;;  %s4443_s13 = scalar_lea.hbm %s4839_s1, 512 }
   0x5   :  { %s35_s10 = sshll.u32 %s4607_s30, 4  ;;  %p4444_p0 = scmp.ne.s32.totalorder %s4839_s1, %s4443_s13  ;;  %s36_s10 = int_to_ptr.vmem [resolvable:$true] %s35_s10 }
   0x6   :  { %p4447_p1 = scmp.lt.u32.totalorder %s4443_s13, %s4839_s1 }
   0x8   :  { %p4449_p2 = pnand %p4447_p1, %p4444_p0 }
   0xa   :  { %4452 = shalt.err (!%p4449_p2)
}
   0xb   :  { %s4453_s18 = scalar_lea.vmem %s36_s10, 512  ;;  %p4458_p4 = scmp.lt.s32.totalorder %s36_s10, %s36_s10 }
   0xc   :  { %p4454_p3 = scmp.ne.s32.totalorder %s36_s10, %s4453_s18  ;;  %p4459_p5 = scmp.lt.s32.totalorder %s4453_s18, %s4453_s18 }
   0xe   :  { %p4460_p6 = por %p4459_p5, %p4458_p4 }
  0x10   :  { %p4461_p7 = pnand %p4460_p6, %p4454_p3 }
  0x12   :  { %4464 = shalt.err (!%p4461_p7)
}
  0x13   :  { %38 = dma.hbm_to_vmem [thread:$0]  %s4839_s1, 512, %s36_s10, [#allocation6]  }
  0x14   :  { %s4608_s21 = smov [#allocation8]   ;;  %s4609_s23 = smov [#allocation2]  }
  0x15   :  { %s56_s22 = sshll.u32 %s4608_s21, 4  ;;  %s25_s24 = sshll.u32 %s4609_s23, 4  ;;  %s57_s22 = int_to_ptr.vmem [resolvable:$true] %s56_s22  ;;  %s26_s24 = int_to_ptr.vmem [resolvable:$true] %s25_s24 }
  0x16   :  { %s4465_s27 = scalar_lea.hbm %s4841_s3, 16384 }
  0x17   :  { %p4466_p8 = scmp.ne.s32.totalorder %s4841_s3, %s4465_s27  ;;  %p4469_p9 = scmp.lt.u32.totalorder %s4465_s27, %s4841_s3 }
  0x19   :  { %p4471_p10 = pnand %p4469_p9, %p4466_p8 }
  0x1b   :  { %4474 = shalt.err (!%p4471_p10)
}
  0x1c   :  { %s4475_s1 = scalar_lea.vmem %s57_s22, 16384  ;;  %p4480_p12 = scmp.lt.s32.totalorder %s57_s22, %s57_s22 }
  0x1d   :  { %p4476_p11 = scmp.ne.s32.totalorder %s57_s22, %s4475_s1  ;;  %p4481_p13 = scmp.lt.s32.totalorder %s4475_s1, %s4475_s1 }
  0x1f   :  { %p4482_p0 = por %p4481_p13, %p4480_p12 }
  0x21   :  { %p4483_p1 = pnand %p4482_p0, %p4476_p11 }
  0x23   :  { %4486 = shalt.err (!%p4483_p1)
}
  0x24   :  { %s4610_s10 = smov 256   ;;  %s4611_s12 = smov 16  }
  0x25   :  { %62 = dma.hbm_to_vmem [thread:$0]  %s4841_s3, 16384, %s57_s22, [#allocation9], %s4610_s10, %s4610_s10, %s4611_s12  }
  0x26   :  { %s4487_s17 = scalar_lea.hbm %s4838_s0, 512 }
  0x27   :  { %p4488_p2 = scmp.ne.s32.totalorder %s4838_s0, %s4487_s17  ;;  %p4491_p3 = scmp.lt.u32.totalorder %s4487_s17, %s4838_s0 }
  0x29   :  { %p4493_p4 = pnand %p4491_p3, %p4488_p2 }
  0x2b   :  { %4496 = shalt.err (!%p4493_p4)
}
  0x2c   :  { %s4497_s23 = scalar_lea.vmem %s26_s24, 512  ;;  %p4502_p6 = scmp.lt.s32.totalorder %s26_s24, %s26_s24 }
  0x2d   :  { %p4498_p5 = scmp.ne.s32.totalorder %s26_s24, %s4497_s23  ;;  %p4503_p7 = scmp.lt.s32.totalorder %s4497_s23, %s4497_s23 }
  0x2f   :  { %p4504_p8 = por %p4503_p7, %p4502_p6 }
  0x31   :  { %p4505_p9 = pnand %p4504_p8, %p4498_p5 }
  0x33   :  { %4508 = shalt.err (!%p4505_p9)
}
  0x34   :  { %28 = dma.hbm_to_vmem [thread:$0]  %s4838_s0, 512, %s26_s24, [#allocation3]  }
  0x35   :  { %s4612_s25 = smov [#allocation7]   ;;  %s4613_s27 = smov [#allocation10]  }
  0x36   :  { %s44_s26 = sshll.u32 %s4612_s25, 4  ;;  %s70_s28 = sshll.u32 %s4613_s27, 4  ;;  %s45_s26 = int_to_ptr.vmem [resolvable:$true] %s44_s26  ;;  %s71_s28 = int_to_ptr.vmem [resolvable:$true] %s70_s28 }
  0x37   :  { %s4509_s11 = scalar_lea.hbm %s4840_s2, 16384 }
  0x38   :  { %p4510_p10 = scmp.ne.s32.totalorder %s4840_s2, %s4509_s11  ;;  %p4513_p11 = scmp.lt.u32.totalorder %s4509_s11, %s4840_s2 }
  0x3a   :  { %p4515_p12 = pnand %p4513_p11, %p4510_p10 }
  0x3c   :  { %4518 = shalt.err (!%p4515_p12)
}
  0x3d   :  { %s4519_s0 = scalar_lea.vmem %s45_s26, 16384  ;;  %p4524_p0 = scmp.lt.s32.totalorder %s45_s26, %s45_s26 }
  0x3e   :  { %p4520_p13 = scmp.ne.s32.totalorder %s45_s26, %s4519_s0  ;;  %p4525_p1 = scmp.lt.s32.totalorder %s4519_s0, %s4519_s0 }
  0x40   :  { %p4526_p2 = por %p4525_p1, %p4524_p0 }
  0x42   :  { %p4527_p3 = pnand %p4526_p2, %p4520_p13 }
  0x44   :  { %4530 = shalt.err (!%p4527_p3)
}
  0x45   :  { %50 = dma.hbm_to_vmem [thread:$0]  %s4840_s2, 16384, %s45_s26, [#allocation6], %s4610_s10, %s4610_s10, %s4611_s12  }
  0x46   :  { %s4531_s19 = scalar_lea.hbm %s4843_s5, 16384 }
  0x47   :  { %p4532_p4 = scmp.ne.s32.totalorder %s4843_s5, %s4531_s19  ;;  %p4535_p5 = scmp.lt.u32.totalorder %s4531_s19, %s4843_s5 }
  0x49   :  { %p4537_p6 = pnand %p4535_p5, %p4532_p4 }
  0x4b   :  { %4540 = shalt.err (!%p4537_p6)
}
  0x4c   :  { %s4541_s22 = scalar_lea.vmem %s71_s28, 16384  ;;  %p4546_p8 = scmp.lt.s32.totalorder %s71_s28, %s71_s28 }
  0x4d   :  { %p4542_p7 = scmp.ne.s32.totalorder %s71_s28, %s4541_s22  ;;  %p4547_p9 = scmp.lt.s32.totalorder %s4541_s22, %s4541_s22 }
  0x4f   :  { %p4548_p10 = por %p4547_p9, %p4546_p8 }
  0x51   :  { %p4549_p11 = pnand %p4548_p10, %p4542_p7 }
  0x53   :  { %4552 = shalt.err (!%p4549_p11)
}
  0x54   :  { %76 = dma.hbm_to_vmem [thread:$0]  %s4843_s5, 16384, %s71_s28, [#allocation9], %s4610_s10, %s4610_s10, %s4611_s12  }
  0x55   :  { %s4614_s26 = smov [#allocation11]   ;;  %s4553_s11 = scalar_lea.hbm %s4845_s7, 4096 }
  0x56   :  { %s84_s27 = sshll.u32 %s4614_s26, 4  ;;  %p4554_p12 = scmp.ne.s32.totalorder %s4845_s7, %s4553_s11  ;;  %s85_s27 = int_to_ptr.vmem [resolvable:$true] %s84_s27 }
  0x57   :  { %p4557_p13 = scmp.lt.u32.totalorder %s4553_s11, %s4845_s7 }
  0x59   :  { %p4559_p0 = pnand %p4557_p13, %p4554_p12 }
  0x5b   :  { %4562 = shalt.err (!%p4559_p0)
}
  0x5c   :  { %s4563_s0 = scalar_lea.vmem %s85_s27, 4096  ;;  %p4568_p2 = scmp.lt.s32.totalorder %s85_s27, %s85_s27 }
  0x5d   :  { %p4564_p1 = scmp.ne.s32.totalorder %s85_s27, %s4563_s0  ;;  %p4569_p3 = scmp.lt.s32.totalorder %s4563_s0, %s4563_s0 }
  0x5f   :  { %p4570_p4 = por %p4569_p3, %p4568_p2 }
  0x61   :  { %p4571_p5 = pnand %p4570_p4, %p4564_p1 }
  0x63   :  { %4574 = shalt.err (!%p4571_p5)
}
  0x64   :  { %s4615_s5 = smov 64   ;;  %s4616_s10 = smov 4  }
  0x65   :  { %90 = dma.hbm_to_vmem [thread:$0]  %s4845_s7, 4096, %s85_s27, [#allocation12], %s4615_s5, %s4615_s5, %s4616_s10  }
  0x66   :  { %4597 = dma.done.wait [#allocation3], 512  }
  0x67   :  { %4598 = vsyncadd [#allocation3], 4294966784 }
  0x68   :  { %4599 = dma.done.wait [#allocation6], 16896  }
  0x69   :  { %4600 = vsyncadd [#allocation6], 4294950400 }
  0x6a   :  { %4601 = dma.done.wait [#allocation9], 32768  }
  0x6b   :  { %4602 = vsyncadd [#allocation9], 4294934528 }
  0x6c   :  { %4603 = dma.done.wait [#allocation12], 4096  }
  0x6d   :  { %4604 = vsyncadd [#allocation12], 4294963200  ;;  %v3835_v0 = vld [vmem:[#allocation8 + $0x4] ss:$16 sps:$4 sm:$0xff]   ;;  %v3839_v2 = vld [vmem:[#allocation8] ss:$16 sps:$4 sm:$0xff]  }
  0x6e   :  { %v3837_v1 = vld [vmem:[#allocation8 + $0x204] ss:$16 sps:$4 sm:$0xff]   ;;  %1024 = vmatprep.subr.bf16.mxu0 %v3835_v0  ;;  %v3840_v3 = vld [vmem:[#allocation8 + $0x200] ss:$16 sps:$4 sm:$0xff]   ;;  %v121_v46 = vld [vmem:[#allocation5 + $0x8] sm:$0xff]  ;;  %s4617_s18 = smov [#allocation13]  }
  0x6f   :  { %1065 = vmatprep.subr.bf16.mxu1 %v3837_v1  ;;  %v3841_v4 = vld [vmem:[#allocation8 + $0x24] ss:$16 sps:$4 sm:$0xff]   ;;  %1025 = vmatpush1.bf16.msra.mxu0 %v3839_v2  ;;  %v3845_v6 = vld [vmem:[#allocation8 + $0x20] ss:$16 sps:$4 sm:$0xff]   ;;  %v4749_v49 = vpack.c.bf16 %v121_v46, %v121_v46  ;;  %v123_v50 = vld [vmem:[#allocation5 + $0x18] sm:$0xff]  ;;  %s3339_s19 = sshll.u32 %s4617_s18, 4  ;;  %s3340_s19 = int_to_ptr.vmem [resolvable:$true] %s3339_s19 }
  0x70   :  { %1066 = vmatpush1.bf16.msra.mxu1 %v3840_v3  ;;  %v3843_v5 = vld [vmem:[#allocation8 + $0x224] ss:$16 sps:$4 sm:$0xff]   ;;  %1026 = vmatprep.subr.bf16.mxu0 %v3841_v4  ;;  %v3846_v7 = vld [vmem:[#allocation8 + $0x220] ss:$16 sps:$4 sm:$0xff]   ;;  %v127_v52 = vpack.c.bf16 %v123_v50, %v123_v50  ;;  %v3985_v46 = vld [vmem:[#allocation8 + $0x128] ss:$16 sps:$4 sm:$0xff]   ;;  %p4580_p7 = scmp.lt.s32.totalorder %s3340_s19, %s3340_s19 }
  0x71   :  { %1067 = vmatprep.subr.bf16.mxu1 %v3843_v5  ;;  %v3847_v8 = vld [vmem:[#allocation8 + $0x44] ss:$16 sps:$4 sm:$0xff]   ;;  %v3851_v10 = vld [vmem:[#allocation8 + $0x40] ss:$16 sps:$4 sm:$0xff]   ;;  %1056 = vmatprep.mubr.bf16.mxu0 %v4749_v49  ;;  %v3991_v50 = vld [vmem:[#allocation8 + $0x148] ss:$16 sps:$4 sm:$0xff]  }
  0x72   :  { %v3849_v9 = vld [vmem:[#allocation8 + $0x244] ss:$16 sps:$4 sm:$0xff]   ;;  %v3852_v11 = vld [vmem:[#allocation8 + $0x240] ss:$16 sps:$4 sm:$0xff]   ;;  %1097 = vmatprep.mubr.bf16.mxu1 %v127_v52  ;;  %vm3331_vm0 = vcmask 56320   ;;  %s4575_s20 = scalar_lea.vmem %s3340_s19, 128 }
  0x73   :  { %1027 = vmatpush1.bf16.msra.mxu0 %v3845_v6  ;;  %v3853_v12 = vld [vmem:[#allocation8 + $0x64] ss:$16 sps:$4 sm:$0xff]   ;;  %v3857_v14 = vld [vmem:[#allocation8 + $0x60] ss:$16 sps:$4 sm:$0xff]   ;;  %v3933_v6 = vld [vmem:[#allocation8 + $0xc] ss:$16 sps:$4 sm:$0xff]   ;;  %p4576_p6 = scmp.ne.s32.totalorder %s3340_s19, %s4575_s20  ;;  %p4581_p8 = scmp.lt.s32.totalorder %s4575_s20, %s4575_s20 }
  0x74   :  { %1068 = vmatpush1.bf16.msra.mxu1 %v3846_v7  ;;  %1028 = vmatprep.subr.bf16.mxu0 %v3847_v8  ;;  %v3855_v13 = vld [vmem:[#allocation8 + $0x264] ss:$16 sps:$4 sm:$0xff]   ;;  %v3858_v15 = vld [vmem:[#allocation8 + $0x260] ss:$16 sps:$4 sm:$0xff]   ;;  %v3936_v7 = vld [vmem:[#allocation8 + $0x20c] ss:$16 sps:$4 sm:$0xff]  }
  0x75   :  { %1069 = vmatprep.subr.bf16.mxu1 %v3849_v9  ;;  %v3859_v16 = vld [vmem:[#allocation8 + $0x84] ss:$16 sps:$4 sm:$0xff]   ;;  %v3863_v18 = vld [vmem:[#allocation8 + $0x80] ss:$16 sps:$4 sm:$0xff]   ;;  %p4582_p9 = por %p4581_p8, %p4580_p7 }
  0x76   :  { %v3861_v17 = vld [vmem:[#allocation8 + $0x284] ss:$16 sps:$4 sm:$0xff]   ;;  %v3864_v19 = vld [vmem:[#allocation8 + $0x280] ss:$16 sps:$4 sm:$0xff]  }
  0x77   :  { %1029 = vmatpush1.bf16.msra.mxu0 %v3851_v10  ;;  %v3865_v20 = vld [vmem:[#allocation8 + $0xa4] ss:$16 sps:$4 sm:$0xff]   ;;  %v3869_v22 = vld [vmem:[#allocation8 + $0xa0] ss:$16 sps:$4 sm:$0xff]   ;;  %v3931_v10 = vld [vmem:[#allocation8 + $0x8] ss:$16 sps:$4 sm:$0xff]   ;;  %p4583_p10 = pnand %p4582_p9, %p4576_p6 }
  0x78   :  { %1070 = vmatpush1.bf16.msra.mxu1 %v3852_v11  ;;  %1030 = vmatprep.subr.bf16.mxu0 %v3853_v12  ;;  %v3867_v21 = vld [vmem:[#allocation8 + $0x2a4] ss:$16 sps:$4 sm:$0xff]   ;;  %v3870_v23 = vld [vmem:[#allocation8 + $0x2a0] ss:$16 sps:$4 sm:$0xff]   ;;  %v3934_v11 = vld [vmem:[#allocation8 + $0x208] ss:$16 sps:$4 sm:$0xff]  }
  0x79   :  { %1071 = vmatprep.subr.bf16.mxu1 %v3855_v13  ;;  %v3871_v24 = vld [vmem:[#allocation8 + $0xc4] ss:$16 sps:$4 sm:$0xff]   ;;  %v3875_v26 = vld [vmem:[#allocation8 + $0xc0] ss:$16 sps:$4 sm:$0xff]   ;;  %v3939_v12 = vld [vmem:[#allocation8 + $0x2c] ss:$16 sps:$4 sm:$0xff]  }
  0x7a   :  { %v3873_v25 = vld [vmem:[#allocation8 + $0x2c4] ss:$16 sps:$4 sm:$0xff]   ;;  %v3876_v27 = vld [vmem:[#allocation8 + $0x2c0] ss:$16 sps:$4 sm:$0xff]   ;;  %v3942_v13 = vld [vmem:[#allocation8 + $0x22c] ss:$16 sps:$4 sm:$0xff]  }
  0x7b   :  { %1031 = vmatpush1.bf16.msra.mxu0 %v3857_v14  ;;  %v3877_v28 = vld [vmem:[#allocation8 + $0xe4] ss:$16 sps:$4 sm:$0xff]   ;;  %v3881_v30 = vld [vmem:[#allocation8 + $0xe0] ss:$16 sps:$4 sm:$0xff]   ;;  %v3937_v14 = vld [vmem:[#allocation8 + $0x28] ss:$16 sps:$4 sm:$0xff]  }
  0x7c   :  { %1072 = vmatpush1.bf16.msra.mxu1 %v3858_v15  ;;  %1032 = vmatprep.subr.bf16.mxu0 %v3859_v16  ;;  %v3879_v29 = vld [vmem:[#allocation8 + $0x2e4] ss:$16 sps:$4 sm:$0xff]   ;;  %v3882_v31 = vld [vmem:[#allocation8 + $0x2e0] ss:$16 sps:$4 sm:$0xff]   ;;  %v3940_v15 = vld [vmem:[#allocation8 + $0x228] ss:$16 sps:$4 sm:$0xff]  }
  0x7d   :  { %1073 = vmatprep.subr.bf16.mxu1 %v3861_v17  ;;  %v3883_v32 = vld [vmem:[#allocation8 + $0x104] ss:$16 sps:$4 sm:$0xff]   ;;  %v3887_v34 = vld [vmem:[#allocation8 + $0x100] ss:$16 sps:$4 sm:$0xff]   ;;  %v3945_v16 = vld [vmem:[#allocation8 + $0x4c] ss:$16 sps:$4 sm:$0xff]  }
  0x7e   :  { %v3885_v33 = vld [vmem:[#allocation8 + $0x304] ss:$16 sps:$4 sm:$0xff]   ;;  %v3888_v35 = vld [vmem:[#allocation8 + $0x300] ss:$16 sps:$4 sm:$0xff]   ;;  %v3948_v17 = vld [vmem:[#allocation8 + $0x24c] ss:$16 sps:$4 sm:$0xff]  }
  0x7f   :  { %1033 = vmatpush1.bf16.msra.mxu0 %v3863_v18  ;;  %v3889_v36 = vld [vmem:[#allocation8 + $0x124] ss:$16 sps:$4 sm:$0xff]   ;;  %v3893_v38 = vld [vmem:[#allocation8 + $0x120] ss:$16 sps:$4 sm:$0xff]   ;;  %v3943_v18 = vld [vmem:[#allocation8 + $0x48] ss:$16 sps:$4 sm:$0xff]  }
  0x80   :  { %1074 = vmatpush1.bf16.msra.mxu1 %v3864_v19  ;;  %1034 = vmatprep.subr.bf16.mxu0 %v3865_v20  ;;  %v3891_v37 = vld [vmem:[#allocation8 + $0x324] ss:$16 sps:$4 sm:$0xff]   ;;  %v3894_v39 = vld [vmem:[#allocation8 + $0x320] ss:$16 sps:$4 sm:$0xff]   ;;  %v3946_v19 = vld [vmem:[#allocation8 + $0x248] ss:$16 sps:$4 sm:$0xff]  }
  0x81   :  { %1075 = vmatprep.subr.bf16.mxu1 %v3867_v21  ;;  %v3895_v40 = vld [vmem:[#allocation8 + $0x144] ss:$16 sps:$4 sm:$0xff]   ;;  %v3899_v42 = vld [vmem:[#allocation8 + $0x140] ss:$16 sps:$4 sm:$0xff]   ;;  %v3951_v20 = vld [vmem:[#allocation8 + $0x6c] ss:$16 sps:$4 sm:$0xff]  }
  0x82   :  { %v3897_v41 = vld [vmem:[#allocation8 + $0x344] ss:$16 sps:$4 sm:$0xff]   ;;  %v3900_v43 = vld [vmem:[#allocation8 + $0x340] ss:$16 sps:$4 sm:$0xff]   ;;  %v3954_v21 = vld [vmem:[#allocation8 + $0x26c] ss:$16 sps:$4 sm:$0xff]  }
  0x83   :  { %1035 = vmatpush1.bf16.msra.mxu0 %v3869_v22  ;;  %v3901_v44 = vld [vmem:[#allocation8 + $0x164] ss:$16 sps:$4 sm:$0xff]   ;;  %v3905_v47 = vld [vmem:[#allocation8 + $0x160] ss:$16 sps:$4 sm:$0xff]   ;;  %v3949_v22 = vld [vmem:[#allocation8 + $0x68] ss:$16 sps:$4 sm:$0xff]  }
  0x84   :  { %1076 = vmatpush1.bf16.msra.mxu1 %v3870_v23  ;;  %1036 = vmatprep.subr.bf16.mxu0 %v3871_v24  ;;  %v3903_v45 = vld [vmem:[#allocation8 + $0x364] ss:$16 sps:$4 sm:$0xff]   ;;  %v3906_v48 = vld [vmem:[#allocation8 + $0x360] ss:$16 sps:$4 sm:$0xff]   ;;  %v3952_v23 = vld [vmem:[#allocation8 + $0x268] ss:$16 sps:$4 sm:$0xff]  }
  0x85   :  { %1077 = vmatprep.subr.bf16.mxu1 %v3873_v25  ;;  %v3907_v51 = vld [vmem:[#allocation8 + $0x184] ss:$16 sps:$4 sm:$0xff]   ;;  %v3911_v54 = vld [vmem:[#allocation8 + $0x180] ss:$16 sps:$4 sm:$0xff]   ;;  %v3957_v24 = vld [vmem:[#allocation8 + $0x8c] ss:$16 sps:$4 sm:$0xff]  }
  0x86   :  { %v3909_v53 = vld [vmem:[#allocation8 + $0x384] ss:$16 sps:$4 sm:$0xff]   ;;  %v3912_v55 = vld [vmem:[#allocation8 + $0x380] ss:$16 sps:$4 sm:$0xff]   ;;  %v3960_v25 = vld [vmem:[#allocation8 + $0x28c] ss:$16 sps:$4 sm:$0xff]  }
  0x87   :  { %1037 = vmatpush1.bf16.msra.mxu0 %v3875_v26  ;;  %v3913_v56 = vld [vmem:[#allocation8 + $0x1a4] ss:$16 sps:$4 sm:$0xff]   ;;  %v3917_v58 = vld [vmem:[#allocation8 + $0x1a0] ss:$16 sps:$4 sm:$0xff]   ;;  %v3955_v26 = vld [vmem:[#allocation8 + $0x88] ss:$16 sps:$4 sm:$0xff]  }
  0x88   :  { %1078 = vmatpush1.bf16.msra.mxu1 %v3876_v27  ;;  %1038 = vmatprep.subr.bf16.mxu0 %v3877_v28  ;;  %v3915_v57 = vld [vmem:[#allocation8 + $0x3a4] ss:$16 sps:$4 sm:$0xff]   ;;  %v3918_v59 = vld [vmem:[#allocation8 + $0x3a0] ss:$16 sps:$4 sm:$0xff]   ;;  %v3958_v27 = vld [vmem:[#allocation8 + $0x288] ss:$16 sps:$4 sm:$0xff]  }
  0x89   :  { %1079 = vmatprep.subr.bf16.mxu1 %v3879_v29  ;;  %v3919_v60 = vld [vmem:[#allocation8 + $0x1c4] ss:$16 sps:$4 sm:$0xff]   ;;  %v3923_v62 = vld [vmem:[#allocation8 + $0x1c0] ss:$16 sps:$4 sm:$0xff]   ;;  %v3963_v28 = vld [vmem:[#allocation8 + $0xac] ss:$16 sps:$4 sm:$0xff]  }
  0x8a   :  { %v3921_v61 = vld [vmem:[#allocation8 + $0x3c4] ss:$16 sps:$4 sm:$0xff]   ;;  %v3924_v63 = vld [vmem:[#allocation8 + $0x3c0] ss:$16 sps:$4 sm:$0xff]   ;;  %v3966_v29 = vld [vmem:[#allocation8 + $0x2ac] ss:$16 sps:$4 sm:$0xff]  }
  0x8b   :  { %1039 = vmatpush1.bf16.msra.mxu0 %v3881_v30  ;;  %v3925_v0 = vld [vmem:[#allocation8 + $0x1e4] ss:$16 sps:$4 sm:$0xff]   ;;  %v3929_v2 = vld [vmem:[#allocation8 + $0x1e0] ss:$16 sps:$4 sm:$0xff]   ;;  %v3961_v30 = vld [vmem:[#allocation8 + $0xa8] ss:$16 sps:$4 sm:$0xff]  }
  0x8c   :  { %1080 = vmatpush1.bf16.msra.mxu1 %v3882_v31  ;;  %1040 = vmatprep.subr.bf16.mxu0 %v3883_v32  ;;  %v3927_v1 = vld [vmem:[#allocation8 + $0x3e4] ss:$16 sps:$4 sm:$0xff]   ;;  %v3930_v3 = vld [vmem:[#allocation8 + $0x3e0] ss:$16 sps:$4 sm:$0xff]   ;;  %v3964_v31 = vld [vmem:[#allocation8 + $0x2a8] ss:$16 sps:$4 sm:$0xff]  }
  0x8d   :  { %1081 = vmatprep.subr.bf16.mxu1 %v3885_v33  ;;  %v120_v4 = vld [vmem:[#allocation5] sm:$0xff]  ;;  %v122_v5 = vld [vmem:[#allocation5 + $0x10] sm:$0xff]  ;;  %v3969_v32 = vld [vmem:[#allocation8 + $0xcc] ss:$16 sps:$4 sm:$0xff]  }
  0x8e   :  { %v4752_v8 = vpack.c.bf16 %v120_v4, %v120_v4  ;;  %v4754_v9 = vpack.c.bf16 %v122_v5, %v122_v5  ;;  %v3972_v33 = vld [vmem:[#allocation8 + $0x2cc] ss:$16 sps:$4 sm:$0xff]  }
  0x8f   :  { %1041 = vmatpush1.bf16.msra.mxu0 %v3887_v34  ;;  %v3967_v34 = vld [vmem:[#allocation8 + $0xc8] ss:$16 sps:$4 sm:$0xff]   ;;  %v4023_v4 = vld [vmem:[#allocation8 + $0x1ec] ss:$16 sps:$4 sm:$0xff]  }
  0x90   :  { %1082 = vmatpush1.bf16.msra.mxu1 %v3888_v35  ;;  %1042 = vmatprep.subr.bf16.mxu0 %v3889_v36  ;;  %v3970_v35 = vld [vmem:[#allocation8 + $0x2c8] ss:$16 sps:$4 sm:$0xff]   ;;  %v3975_v36 = vld [vmem:[#allocation8 + $0xec] ss:$16 sps:$4 sm:$0xff]  }
  0x91   :  { %1083 = vmatprep.subr.bf16.mxu1 %v3891_v37  ;;  %v3978_v37 = vld [vmem:[#allocation8 + $0x2ec] ss:$16 sps:$4 sm:$0xff]  }
  0x92   :  { %v4026_v5 = vld [vmem:[#allocation8 + $0x3ec] ss:$16 sps:$4 sm:$0xff]  }
  0x93   :  { %1043 = vmatpush1.bf16.msra.mxu0 %v3893_v38  ;;  %v3973_v38 = vld [vmem:[#allocation8 + $0xe8] ss:$16 sps:$4 sm:$0xff]  }
  0x94   :  { %1084 = vmatpush1.bf16.msra.mxu1 %v3894_v39  ;;  %1044 = vmatprep.subr.bf16.mxu0 %v3895_v40  ;;  %v3976_v39 = vld [vmem:[#allocation8 + $0x2e8] ss:$16 sps:$4 sm:$0xff]   ;;  %v3981_v40 = vld [vmem:[#allocation8 + $0x10c] ss:$16 sps:$4 sm:$0xff]  }
  0x95   :  { %1085 = vmatprep.subr.bf16.mxu1 %v3897_v41  ;;  %v3984_v41 = vld [vmem:[#allocation8 + $0x30c] ss:$16 sps:$4 sm:$0xff]  }
  0x97   :  { %1045 = vmatpush1.bf16.msra.mxu0 %v3899_v42  ;;  %v3979_v42 = vld [vmem:[#allocation8 + $0x108] ss:$16 sps:$4 sm:$0xff]  }
  0x98   :  { %1086 = vmatpush1.bf16.msra.mxu1 %v3900_v43  ;;  %1046 = vmatprep.subr.bf16.mxu0 %v3901_v44  ;;  %v3982_v43 = vld [vmem:[#allocation8 + $0x308] ss:$16 sps:$4 sm:$0xff]   ;;  %v3987_v44 = vld [vmem:[#allocation8 + $0x12c] ss:$16 sps:$4 sm:$0xff]  }
  0x99   :  { %1087 = vmatprep.subr.bf16.mxu1 %v3903_v45  ;;  %v3990_v45 = vld [vmem:[#allocation8 + $0x32c] ss:$16 sps:$4 sm:$0xff]  }
  0x9b   :  { %1047 = vmatpush1.bf16.msra.mxu0 %v3905_v47  ;;  %v3988_v47 = vld [vmem:[#allocation8 + $0x328] ss:$16 sps:$4 sm:$0xff]  }
  0x9c   :  { %1088 = vmatpush1.bf16.msra.mxu1 %v3906_v48  ;;  %1048 = vmatprep.subr.bf16.mxu0 %v3907_v51  ;;  %v3993_v48 = vld [vmem:[#allocation8 + $0x14c] ss:$16 sps:$4 sm:$0xff]   ;;  %v3994_v51 = vld [vmem:[#allocation8 + $0x348] ss:$16 sps:$4 sm:$0xff]  }
  0x9d   :  { %1089 = vmatprep.subr.bf16.mxu1 %v3909_v53  ;;  %v4002_v53 = vld [vmem:[#allocation8 + $0x36c] ss:$16 sps:$4 sm:$0xff]  }
  0x9f   :  { %1049 = vmatpush1.bf16.msra.mxu0 %v3911_v54  ;;  %v3997_v54 = vld [vmem:[#allocation8 + $0x168] ss:$16 sps:$4 sm:$0xff]  }
  0xa0   :  { %1090 = vmatpush1.bf16.msra.mxu1 %v3912_v55  ;;  %1050 = vmatprep.subr.bf16.mxu0 %v3913_v56  ;;  %v4000_v55 = vld [vmem:[#allocation8 + $0x368] ss:$16 sps:$4 sm:$0xff]   ;;  %v4005_v56 = vld [vmem:[#allocation8 + $0x18c] ss:$16 sps:$4 sm:$0xff]  }
  0xa1   :  { %1091 = vmatprep.subr.bf16.mxu1 %v3915_v57  ;;  %v4008_v57 = vld [vmem:[#allocation8 + $0x38c] ss:$16 sps:$4 sm:$0xff]  }
  0xa3   :  { %1051 = vmatpush1.bf16.msra.mxu0 %v3917_v58  ;;  %v4003_v58 = vld [vmem:[#allocation8 + $0x188] ss:$16 sps:$4 sm:$0xff]  }
  0xa4   :  { %1092 = vmatpush1.bf16.msra.mxu1 %v3918_v59  ;;  %1052 = vmatprep.subr.bf16.mxu0 %v3919_v60  ;;  %v4006_v59 = vld [vmem:[#allocation8 + $0x388] ss:$16 sps:$4 sm:$0xff]   ;;  %v4011_v60 = vld [vmem:[#allocation8 + $0x1ac] ss:$16 sps:$4 sm:$0xff]  }
  0xa5   :  { %1093 = vmatprep.subr.bf16.mxu1 %v3921_v61  ;;  %v4014_v61 = vld [vmem:[#allocation8 + $0x3ac] ss:$16 sps:$4 sm:$0xff]  }
  0xa7   :  { %1053 = vmatpush1.bf16.msra.mxu0 %v3923_v62  ;;  %v4009_v62 = vld [vmem:[#allocation8 + $0x1a8] ss:$16 sps:$4 sm:$0xff]  }
  0xa8   :  { %1094 = vmatpush1.bf16.msra.mxu1 %v3924_v63  ;;  %1054 = vmatprep.subr.bf16.mxu0 %v3925_v0  ;;  %v4012_v63 = vld [vmem:[#allocation8 + $0x3a8] ss:$16 sps:$4 sm:$0xff]   ;;  %v4017_v0 = vld [vmem:[#allocation8 + $0x1cc] ss:$16 sps:$4 sm:$0xff]  }
  0xa9   :  { %1095 = vmatprep.subr.bf16.mxu1 %v3927_v1  ;;  %v4020_v1 = vld [vmem:[#allocation8 + $0x3cc] ss:$16 sps:$4 sm:$0xff]  }
  0xab   :  { %1055 = vmatpush1.bf16.msra.mxu0 %v3929_v2  ;;  %v4015_v2 = vld [vmem:[#allocation8 + $0x1c8] ss:$16 sps:$4 sm:$0xff]  }
  0xac   :  { %1096 = vmatpush1.bf16.msra.mxu1 %v3930_v3  ;;  %1106 = vmatprep.subr.bf16.mxu0 %v3933_v6  ;;  %v4018_v3 = vld [vmem:[#allocation8 + $0x3c8] ss:$16 sps:$4 sm:$0xff]  }
  0xad   :  { %1147 = vmatprep.subr.bf16.mxu1 %v3936_v7  ;;  %v4021_v6 = vld [vmem:[#allocation8 + $0x1e8] ss:$16 sps:$4 sm:$0xff]  }
  0xae   :  { %1057 = vmatmul.mubr.bf16.vlgmr.msra.gmra.mrb[0].mxu0 %v4752_v8  ;;  %v4024_v7 = vld [vmem:[#allocation8 + $0x3e8] ss:$16 sps:$4 sm:$0xff]  }
  0xaf   :  { %1098 = vmatmul.mubr.bf16.vlgmr.msra.gmra.mrb[0].mxu1 %v4754_v9  ;;  %1107 = vmatpush1.bf16.msra.mxu0 %v3931_v10  ;;  %v4029_v10 = vld [vmem:[#allocation7 + $0x4] ss:$16 sps:$4 sm:$0xff]  }
  0xb0   :  { %1148 = vmatpush1.bf16.msra.mxu1 %v3934_v11  ;;  %1108 = vmatprep.subr.bf16.mxu0 %v3939_v12  ;;  %v4032_v11 = vld [vmem:[#allocation7 + $0x204] ss:$16 sps:$4 sm:$0xff]   ;;  %v4027_v12 = vld [vmem:[#allocation7] ss:$16 sps:$4 sm:$0xff]  }
  0xb1   :  { %1149 = vmatprep.subr.bf16.mxu1 %v3942_v13  ;;  %1138 = vmatprep.mubr.bf16.mxu0 %v4749_v49  ;;  %v3996_v49 = vld [vmem:[#allocation8 + $0x34c] ss:$16 sps:$4 sm:$0xff]   ;;  %v4030_v13 = vld [vmem:[#allocation7 + $0x200] ss:$16 sps:$4 sm:$0xff]  }
  0xb2   :  { %1179 = vmatprep.mubr.bf16.mxu1 %v127_v52  ;;  %v3999_v52 = vld [vmem:[#allocation8 + $0x16c] ss:$16 sps:$4 sm:$0xff]  }
  0xb3   :  { %1109 = vmatpush1.bf16.msra.mxu0 %v3937_v14  ;;  %v4035_v14 = vld [vmem:[#allocation7 + $0x24] ss:$16 sps:$4 sm:$0xff]  }
  0xb4   :  { %1150 = vmatpush1.bf16.msra.mxu1 %v3940_v15  ;;  %1110 = vmatprep.subr.bf16.mxu0 %v3945_v16  ;;  %v4038_v15 = vld [vmem:[#allocation7 + $0x224] ss:$16 sps:$4 sm:$0xff]   ;;  %v113_v16 = vld [vmem:[#allocation2 + $0x8] sm:$0xff] }
  0xb5   :  { %1151 = vmatprep.subr.bf16.mxu1 %v3948_v17  ;;  %v115_v17 = vld [vmem:[#allocation2 + $0x18] sm:$0xff] }
  0xb7   :  { %1111 = vmatpush1.bf16.msra.mxu0 %v3943_v18  ;;  %v4759_v18 = vpack.c.bf16 %v113_v16, %v113_v16  ;;  %v4125_v16 = vld [vmem:[#allocation7 + $0xc] ss:$16 sps:$4 sm:$0xff]  }
  0xb8   :  { %1152 = vmatpush1.bf16.msra.mxu1 %v3946_v19  ;;  %1112 = vmatprep.subr.bf16.mxu0 %v3951_v20  ;;  %v4761_v19 = vpack.c.bf16 %v115_v17, %v115_v17  ;;  %v4033_v20 = vld [vmem:[#allocation7 + $0x20] ss:$16 sps:$4 sm:$0xff]   ;;  %v4128_v17 = vld [vmem:[#allocation7 + $0x20c] ss:$16 sps:$4 sm:$0xff]  }
  0xb9   :  { %1153 = vmatprep.subr.bf16.mxu1 %v3954_v21  ;;  %v4036_v21 = vld [vmem:[#allocation7 + $0x220] ss:$16 sps:$4 sm:$0xff]  }
  0xbb   :  { %1113 = vmatpush1.bf16.msra.mxu0 %v3949_v22  ;;  %v4041_v22 = vld [vmem:[#allocation7 + $0x44] ss:$16 sps:$4 sm:$0xff]  }
  0xbc   :  { %1154 = vmatpush1.bf16.msra.mxu1 %v3952_v23  ;;  %1114 = vmatprep.subr.bf16.mxu0 %v3957_v24  ;;  %v4044_v23 = vld [vmem:[#allocation7 + $0x244] ss:$16 sps:$4 sm:$0xff]   ;;  %v4039_v24 = vld [vmem:[#allocation7 + $0x40] ss:$16 sps:$4 sm:$0xff]  }
  0xbd   :  { %1155 = vmatprep.subr.bf16.mxu1 %v3960_v25  ;;  %v4042_v25 = vld [vmem:[#allocation7 + $0x240] ss:$16 sps:$4 sm:$0xff]  }
  0xbf   :  { %1115 = vmatpush1.bf16.msra.mxu0 %v3955_v26  ;;  %v4047_v26 = vld [vmem:[#allocation7 + $0x64] ss:$16 sps:$4 sm:$0xff]  }
  0xc0   :  { %1156 = vmatpush1.bf16.msra.mxu1 %v3958_v27  ;;  %1116 = vmatprep.subr.bf16.mxu0 %v3963_v28  ;;  %v4048_v27 = vld [vmem:[#allocation7 + $0x260] ss:$16 sps:$4 sm:$0xff]   ;;  %v4053_v28 = vld [vmem:[#allocation7 + $0x84] ss:$16 sps:$4 sm:$0xff]  }
  0xc1   :  { %1157 = vmatprep.subr.bf16.mxu1 %v3966_v29  ;;  %v4056_v29 = vld [vmem:[#allocation7 + $0x284] ss:$16 sps:$4 sm:$0xff]  }
  0xc3   :  { %1117 = vmatpush1.bf16.msra.mxu0 %v3961_v30  ;;  %v4051_v30 = vld [vmem:[#allocation7 + $0x80] ss:$16 sps:$4 sm:$0xff]  }
  0xc4   :  { %1158 = vmatpush1.bf16.msra.mxu1 %v3964_v31  ;;  %1118 = vmatprep.subr.bf16.mxu0 %v3969_v32  ;;  %v4054_v31 = vld [vmem:[#allocation7 + $0x280] ss:$16 sps:$4 sm:$0xff]   ;;  %v4059_v32 = vld [vmem:[#allocation7 + $0xa4] ss:$16 sps:$4 sm:$0xff]  }
  0xc5   :  { %1159 = vmatprep.subr.bf16.mxu1 %v3972_v33  ;;  %v4062_v33 = vld [vmem:[#allocation7 + $0x2a4] ss:$16 sps:$4 sm:$0xff]  }
  0xc7   :  { %1119 = vmatpush1.bf16.msra.mxu0 %v3967_v34  ;;  %v4057_v34 = vld [vmem:[#allocation7 + $0xa0] ss:$16 sps:$4 sm:$0xff]  }
  0xc8   :  { %1160 = vmatpush1.bf16.msra.mxu1 %v3970_v35  ;;  %1120 = vmatprep.subr.bf16.mxu0 %v3975_v36  ;;  %v4060_v35 = vld [vmem:[#allocation7 + $0x2a0] ss:$16 sps:$4 sm:$0xff]   ;;  %v4065_v36 = vld [vmem:[#allocation7 + $0xc4] ss:$16 sps:$4 sm:$0xff]  }
  0xc9   :  { %1161 = vmatprep.subr.bf16.mxu1 %v3978_v37  ;;  %v4068_v37 = vld [vmem:[#allocation7 + $0x2c4] ss:$16 sps:$4 sm:$0xff]  }
  0xcb   :  { %1121 = vmatpush1.bf16.msra.mxu0 %v3973_v38  ;;  %v4063_v38 = vld [vmem:[#allocation7 + $0xc0] ss:$16 sps:$4 sm:$0xff]  }
  0xcc   :  { %1162 = vmatpush1.bf16.msra.mxu1 %v3976_v39  ;;  %1122 = vmatprep.subr.bf16.mxu0 %v3981_v40  ;;  %v4066_v39 = vld [vmem:[#allocation7 + $0x2c0] ss:$16 sps:$4 sm:$0xff]   ;;  %v4071_v40 = vld [vmem:[#allocation7 + $0xe4] ss:$16 sps:$4 sm:$0xff]  }
  0xcd   :  { %1163 = vmatprep.subr.bf16.mxu1 %v3984_v41  ;;  %v4074_v41 = vld [vmem:[#allocation7 + $0x2e4] ss:$16 sps:$4 sm:$0xff]  }
  0xcf   :  { %1123 = vmatpush1.bf16.msra.mxu0 %v3979_v42  ;;  %v4069_v42 = vld [vmem:[#allocation7 + $0xe0] ss:$16 sps:$4 sm:$0xff]  }
  0xd0   :  { %1164 = vmatpush1.bf16.msra.mxu1 %v3982_v43  ;;  %1124 = vmatprep.subr.bf16.mxu0 %v3987_v44  ;;  %v4072_v43 = vld [vmem:[#allocation7 + $0x2e0] ss:$16 sps:$4 sm:$0xff]   ;;  %v4077_v44 = vld [vmem:[#allocation7 + $0x104] ss:$16 sps:$4 sm:$0xff]  }
  0xd1   :  { %1165 = vmatprep.subr.bf16.mxu1 %v3990_v45  ;;  %v4080_v45 = vld [vmem:[#allocation7 + $0x304] ss:$16 sps:$4 sm:$0xff]  }
  0xd3   :  { %1125 = vmatpush1.bf16.msra.mxu0 %v3985_v46  ;;  %v4075_v46 = vld [vmem:[#allocation7 + $0x100] ss:$16 sps:$4 sm:$0xff]  }
  0xd4   :  { %1166 = vmatpush1.bf16.msra.mxu1 %v3988_v47  ;;  %1126 = vmatprep.subr.bf16.mxu0 %v3993_v48  ;;  %v4078_v47 = vld [vmem:[#allocation7 + $0x300] ss:$16 sps:$4 sm:$0xff]   ;;  %v4083_v48 = vld [vmem:[#allocation7 + $0x124] ss:$16 sps:$4 sm:$0xff]  }
  0xd5   :  { %1167 = vmatprep.subr.bf16.mxu1 %v3996_v49  ;;  %v4086_v49 = vld [vmem:[#allocation7 + $0x324] ss:$16 sps:$4 sm:$0xff]  }
  0xd7   :  { %1127 = vmatpush1.bf16.msra.mxu0 %v3991_v50  ;;  %v4081_v50 = vld [vmem:[#allocation7 + $0x120] ss:$16 sps:$4 sm:$0xff]  }
  0xd8   :  { %1168 = vmatpush1.bf16.msra.mxu1 %v3994_v51  ;;  %1128 = vmatprep.subr.bf16.mxu0 %v3999_v52  ;;  %v4084_v51 = vld [vmem:[#allocation7 + $0x320] ss:$16 sps:$4 sm:$0xff]   ;;  %v4089_v52 = vld [vmem:[#allocation7 + $0x144] ss:$16 sps:$4 sm:$0xff]  }
  0xd9   :  { %1169 = vmatprep.subr.bf16.mxu1 %v4002_v53  ;;  %v4092_v53 = vld [vmem:[#allocation7 + $0x344] ss:$16 sps:$4 sm:$0xff]  }
  0xdb   :  { %1129 = vmatpush1.bf16.msra.mxu0 %v3997_v54  ;;  %v4087_v54 = vld [vmem:[#allocation7 + $0x140] ss:$16 sps:$4 sm:$0xff]  }
  0xdc   :  { %1170 = vmatpush1.bf16.msra.mxu1 %v4000_v55  ;;  %1130 = vmatprep.subr.bf16.mxu0 %v4005_v56  ;;  %v4090_v55 = vld [vmem:[#allocation7 + $0x340] ss:$16 sps:$4 sm:$0xff]   ;;  %v4095_v56 = vld [vmem:[#allocation7 + $0x164] ss:$16 sps:$4 sm:$0xff]  }
  0xdd   :  { %1171 = vmatprep.subr.bf16.mxu1 %v4008_v57  ;;  %v4098_v57 = vld [vmem:[#allocation7 + $0x364] ss:$16 sps:$4 sm:$0xff]  }
  0xdf   :  { %1131 = vmatpush1.bf16.msra.mxu0 %v4003_v58  ;;  %v4093_v58 = vld [vmem:[#allocation7 + $0x160] ss:$16 sps:$4 sm:$0xff]  }
  0xe0   :  { %1172 = vmatpush1.bf16.msra.mxu1 %v4006_v59  ;;  %1132 = vmatprep.subr.bf16.mxu0 %v4011_v60  ;;  %v4096_v59 = vld [vmem:[#allocation7 + $0x360] ss:$16 sps:$4 sm:$0xff]   ;;  %v4101_v60 = vld [vmem:[#allocation7 + $0x184] ss:$16 sps:$4 sm:$0xff]  }
  0xe1   :  { %1173 = vmatprep.subr.bf16.mxu1 %v4014_v61  ;;  %v4104_v61 = vld [vmem:[#allocation7 + $0x384] ss:$16 sps:$4 sm:$0xff]  }
  0xe3   :  { %1133 = vmatpush1.bf16.msra.mxu0 %v4009_v62  ;;  %v4099_v62 = vld [vmem:[#allocation7 + $0x180] ss:$16 sps:$4 sm:$0xff]  }
  0xe4   :  { %1174 = vmatpush1.bf16.msra.mxu1 %v4012_v63  ;;  %1134 = vmatprep.subr.bf16.mxu0 %v4017_v0  ;;  %v4102_v63 = vld [vmem:[#allocation7 + $0x380] ss:$16 sps:$4 sm:$0xff]   ;;  %v4107_v0 = vld [vmem:[#allocation7 + $0x1a4] ss:$16 sps:$4 sm:$0xff]  }
  0xe5   :  { %1175 = vmatprep.subr.bf16.mxu1 %v4020_v1  ;;  %v4110_v1 = vld [vmem:[#allocation7 + $0x3a4] ss:$16 sps:$4 sm:$0xff]  }
  0xe7   :  { %1135 = vmatpush1.bf16.msra.mxu0 %v4015_v2  ;;  %v4105_v2 = vld [vmem:[#allocation7 + $0x1a0] ss:$16 sps:$4 sm:$0xff]  }
  0xe8   :  { %1176 = vmatpush1.bf16.msra.mxu1 %v4018_v3  ;;  %1136 = vmatprep.subr.bf16.mxu0 %v4023_v4  ;;  %v4108_v3 = vld [vmem:[#allocation7 + $0x3a0] ss:$16 sps:$4 sm:$0xff]   ;;  %v4113_v4 = vld [vmem:[#allocation7 + $0x1c4] ss:$16 sps:$4 sm:$0xff]  }
  0xe9   :  { %1177 = vmatprep.subr.bf16.mxu1 %v4026_v5  ;;  %v4116_v5 = vld [vmem:[#allocation7 + $0x3c4] ss:$16 sps:$4 sm:$0xff]  }
  0xeb   :  { %1137 = vmatpush1.bf16.msra.mxu0 %v4021_v6  ;;  %v4111_v6 = vld [vmem:[#allocation7 + $0x1c0] ss:$16 sps:$4 sm:$0xff]  }
  0xec   :  { %1178 = vmatpush1.bf16.msra.mxu1 %v4024_v7  ;;  %1828 = vmatprep.subr.bf16.mxu0 %v4029_v10  ;;  %v4114_v7 = vld [vmem:[#allocation7 + $0x3c0] ss:$16 sps:$4 sm:$0xff]   ;;  %v4119_v10 = vld [vmem:[#allocation7 + $0x1e4] ss:$16 sps:$4 sm:$0xff]  }
  0xed   :  { %1869 = vmatprep.subr.bf16.mxu1 %v4032_v11  ;;  %v4122_v11 = vld [vmem:[#allocation7 + $0x3e4] ss:$16 sps:$4 sm:$0xff]  }
  0xee   :  { %1139 = vmatmul.mubr.bf16.vlgmr.msra.gmra.mrb[4].mxu0 %v4752_v8  ;;  %v4050_v8 = vld [vmem:[#allocation7 + $0x264] ss:$16 sps:$4 sm:$0xff]  }
  0xef   :  { %1180 = vmatmul.mubr.bf16.vlgmr.msra.gmra.mrb[4].mxu1 %v4754_v9  ;;  %1829 = vmatpush1.bf16.msra.mxu0 %v4027_v12  ;;  %v4045_v9 = vld [vmem:[#allocation7 + $0x60] ss:$16 sps:$4 sm:$0xff]  }
  0xf0   :  { %1870 = vmatpush1.bf16.msra.mxu1 %v4030_v13  ;;  %1830 = vmatprep.subr.bf16.mxu0 %v4035_v14  ;;  %v4117_v12 = vld [vmem:[#allocation7 + $0x1e0] ss:$16 sps:$4 sm:$0xff]  }
  0xf1   :  { %1871 = vmatprep.subr.bf16.mxu1 %v4038_v15  ;;  %1860 = vmatprep.mubr.bf16.mxu0 %v4759_v18  ;;  %v4120_v13 = vld [vmem:[#allocation7 + $0x3e0] ss:$16 sps:$4 sm:$0xff]  }
  0xf2   :  { %1901 = vmatprep.mubr.bf16.mxu1 %v4761_v19  ;;  %v112_v14 = vld [vmem:[#allocation2] sm:$0xff]  ;;  %v114_v15 = vld [vmem:[#allocation2 + $0x10] sm:$0xff] }
  0xf3   :  { %1831 = vmatpush1.bf16.msra.mxu0 %v4033_v20  ;;  %v4123_v20 = vld [vmem:[#allocation7 + $0x8] ss:$16 sps:$4 sm:$0xff]  }
  0xf4   :  { %1872 = vmatpush1.bf16.msra.mxu1 %v4036_v21  ;;  %1832 = vmatprep.subr.bf16.mxu0 %v4041_v22  ;;  %v4126_v21 = vld [vmem:[#allocation7 + $0x208] ss:$16 sps:$4 sm:$0xff]   ;;  %v4767_v22 = vpack.c.bf16 %v112_v14, %v112_v14  ;;  %v4215_v14 = vld [vmem:[#allocation7 + $0x1ec] ss:$16 sps:$4 sm:$0xff]  }
  0xf5   :  { %1873 = vmatprep.subr.bf16.mxu1 %v4044_v23  ;;  %v4769_v23 = vpack.c.bf16 %v114_v15, %v114_v15  ;;  %v4218_v15 = vld [vmem:[#allocation7 + $0x3ec] ss:$16 sps:$4 sm:$0xff]  }
  0xf7   :  { %1833 = vmatpush1.bf16.msra.mxu0 %v4039_v24  ;;  %v4131_v24 = vld [vmem:[#allocation7 + $0x2c] ss:$16 sps:$4 sm:$0xff]  }
  0xf8   :  { %1874 = vmatpush1.bf16.msra.mxu1 %v4042_v25  ;;  %1834 = vmatprep.subr.bf16.mxu0 %v4047_v26  ;;  %v4134_v25 = vld [vmem:[#allocation7 + $0x22c] ss:$16 sps:$4 sm:$0xff]   ;;  %v4129_v26 = vld [vmem:[#allocation7 + $0x28] ss:$16 sps:$4 sm:$0xff]  }
  0xf9   :  { %1875 = vmatprep.subr.bf16.mxu1 %v4050_v8  ;;  %v4132_v8 = vld [vmem:[#allocation7 + $0x228] ss:$16 sps:$4 sm:$0xff]  }
  0xfb   :  { %1835 = vmatpush1.bf16.msra.mxu0 %v4045_v9  ;;  %v4137_v9 = vld [vmem:[#allocation7 + $0x4c] ss:$16 sps:$4 sm:$0xff]  }
  0xfc   :  { %1876 = vmatpush1.bf16.msra.mxu1 %v4048_v27  ;;  %1836 = vmatprep.subr.bf16.mxu0 %v4053_v28  ;;  %v4140_v27 = vld [vmem:[#allocation7 + $0x24c] ss:$16 sps:$4 sm:$0xff]   ;;  %v4135_v28 = vld [vmem:[#allocation7 + $0x48] ss:$16 sps:$4 sm:$0xff]  }
  0xfd   :  { %1877 = vmatprep.subr.bf16.mxu1 %v4056_v29  ;;  %v4138_v29 = vld [vmem:[#allocation7 + $0x248] ss:$16 sps:$4 sm:$0xff]  }
  0xff   :  { %1837 = vmatpush1.bf16.msra.mxu0 %v4051_v30  ;;  %v4143_v30 = vld [vmem:[#allocation7 + $0x6c] ss:$16 sps:$4 sm:$0xff]  }
 0x100   :  { %1878 = vmatpush1.bf16.msra.mxu1 %v4054_v31  ;;  %1838 = vmatprep.subr.bf16.mxu0 %v4059_v32  ;;  %v4146_v31 = vld [vmem:[#allocation7 + $0x26c] ss:$16 sps:$4 sm:$0xff]   ;;  %v4141_v32 = vld [vmem:[#allocation7 + $0x68] ss:$16 sps:$4 sm:$0xff]  }
 0x101   :  { %1879 = vmatprep.subr.bf16.mxu1 %v4062_v33  ;;  %v4144_v33 = vld [vmem:[#allocation7 + $0x268] ss:$16 sps:$4 sm:$0xff]  }
 0x103   :  { %1839 = vmatpush1.bf16.msra.mxu0 %v4057_v34  ;;  %v4149_v34 = vld [vmem:[#allocation7 + $0x8c] ss:$16 sps:$4 sm:$0xff]  }
 0x104   :  { %1880 = vmatpush1.bf16.msra.mxu1 %v4060_v35  ;;  %1840 = vmatprep.subr.bf16.mxu0 %v4065_v36  ;;  %v4152_v35 = vld [vmem:[#allocation7 + $0x28c] ss:$16 sps:$4 sm:$0xff]   ;;  %v4147_v36 = vld [vmem:[#allocation7 + $0x88] ss:$16 sps:$4 sm:$0xff]  }
 0x105   :  { %1881 = vmatprep.subr.bf16.mxu1 %v4068_v37  ;;  %v4150_v37 = vld [vmem:[#allocation7 + $0x288] ss:$16 sps:$4 sm:$0xff]  }
 0x107   :  { %1841 = vmatpush1.bf16.msra.mxu0 %v4063_v38  ;;  %v4155_v38 = vld [vmem:[#allocation7 + $0xac] ss:$16 sps:$4 sm:$0xff]  }
 0x108   :  { %1882 = vmatpush1.bf16.msra.mxu1 %v4066_v39  ;;  %1842 = vmatprep.subr.bf16.mxu0 %v4071_v40  ;;  %v4156_v39 = vld [vmem:[#allocation7 + $0x2a8] ss:$16 sps:$4 sm:$0xff]   ;;  %v4161_v40 = vld [vmem:[#allocation7 + $0xcc] ss:$16 sps:$4 sm:$0xff]  }
 0x109   :  { %1883 = vmatprep.subr.bf16.mxu1 %v4074_v41  ;;  %v4164_v41 = vld [vmem:[#allocation7 + $0x2cc] ss:$16 sps:$4 sm:$0xff]  }
 0x10b   :  { %1843 = vmatpush1.bf16.msra.mxu0 %v4069_v42  ;;  %v4159_v42 = vld [vmem:[#allocation7 + $0xc8] ss:$16 sps:$4 sm:$0xff]  }
 0x10c   :  { %1884 = vmatpush1.bf16.msra.mxu1 %v4072_v43  ;;  %1844 = vmatprep.subr.bf16.mxu0 %v4077_v44  ;;  %v4162_v43 = vld [vmem:[#allocation7 + $0x2c8] ss:$16 sps:$4 sm:$0xff]   ;;  %v4167_v44 = vld [vmem:[#allocation7 + $0xec] ss:$16 sps:$4 sm:$0xff]  }
 0x10d   :  { %1885 = vmatprep.subr.bf16.mxu1 %v4080_v45  ;;  %v4170_v45 = vld [vmem:[#allocation7 + $0x2ec] ss:$16 sps:$4 sm:$0xff]  }
 0x10f   :  { %1845 = vmatpush1.bf16.msra.mxu0 %v4075_v46  ;;  %v4165_v46 = vld [vmem:[#allocation7 + $0xe8] ss:$16 sps:$4 sm:$0xff]  }
 0x110   :  { %1886 = vmatpush1.bf16.msra.mxu1 %v4078_v47  ;;  %1846 = vmatprep.subr.bf16.mxu0 %v4083_v48  ;;  %v4168_v47 = vld [vmem:[#allocation7 + $0x2e8] ss:$16 sps:$4 sm:$0xff]   ;;  %v4173_v48 = vld [vmem:[#allocation7 + $0x10c] ss:$16 sps:$4 sm:$0xff]  }
 0x111   :  { %1887 = vmatprep.subr.bf16.mxu1 %v4086_v49  ;;  %v4176_v49 = vld [vmem:[#allocation7 + $0x30c] ss:$16 sps:$4 sm:$0xff]  }
 0x113   :  { %1847 = vmatpush1.bf16.msra.mxu0 %v4081_v50  ;;  %v4171_v50 = vld [vmem:[#allocation7 + $0x108] ss:$16 sps:$4 sm:$0xff]  }
 0x114   :  { %1888 = vmatpush1.bf16.msra.mxu1 %v4084_v51  ;;  %1848 = vmatprep.subr.bf16.mxu0 %v4089_v52  ;;  %v4174_v51 = vld [vmem:[#allocation7 + $0x308] ss:$16 sps:$4 sm:$0xff]   ;;  %v4179_v52 = vld [vmem:[#allocation7 + $0x12c] ss:$16 sps:$4 sm:$0xff]  }
 0x115   :  { %1889 = vmatprep.subr.bf16.mxu1 %v4092_v53  ;;  %v4182_v53 = vld [vmem:[#allocation7 + $0x32c] ss:$16 sps:$4 sm:$0xff]  }
 0x117   :  { %1849 = vmatpush1.bf16.msra.mxu0 %v4087_v54  ;;  %v4177_v54 = vld [vmem:[#allocation7 + $0x128] ss:$16 sps:$4 sm:$0xff]  }
 0x118   :  { %1890 = vmatpush1.bf16.msra.mxu1 %v4090_v55  ;;  %1850 = vmatprep.subr.bf16.mxu0 %v4095_v56  ;;  %v4180_v55 = vld [vmem:[#allocation7 + $0x328] ss:$16 sps:$4 sm:$0xff]   ;;  %v4185_v56 = vld [vmem:[#allocation7 + $0x14c] ss:$16 sps:$4 sm:$0xff]  }
 0x119   :  { %1891 = vmatprep.subr.bf16.mxu1 %v4098_v57  ;;  %v4188_v57 = vld [vmem:[#allocation7 + $0x34c] ss:$16 sps:$4 sm:$0xff]  }
 0x11b   :  { %1851 = vmatpush1.bf16.msra.mxu0 %v4093_v58  ;;  %v4183_v58 = vld [vmem:[#allocation7 + $0x148] ss:$16 sps:$4 sm:$0xff]  }
 0x11c   :  { %1892 = vmatpush1.bf16.msra.mxu1 %v4096_v59  ;;  %1852 = vmatprep.subr.bf16.mxu0 %v4101_v60  ;;  %v4186_v59 = vld [vmem:[#allocation7 + $0x348] ss:$16 sps:$4 sm:$0xff]   ;;  %v4191_v60 = vld [vmem:[#allocation7 + $0x16c] ss:$16 sps:$4 sm:$0xff]  }
 0x11d   :  { %1893 = vmatprep.subr.bf16.mxu1 %v4104_v61  ;;  %v4194_v61 = vld [vmem:[#allocation7 + $0x36c] ss:$16 sps:$4 sm:$0xff]  }
 0x11f   :  { %1853 = vmatpush1.bf16.msra.mxu0 %v4099_v62  ;;  %v4189_v62 = vld [vmem:[#allocation7 + $0x168] ss:$16 sps:$4 sm:$0xff]  }
 0x120   :  { %1894 = vmatpush1.bf16.msra.mxu1 %v4102_v63  ;;  %1854 = vmatprep.subr.bf16.mxu0 %v4107_v0  ;;  %v4192_v63 = vld [vmem:[#allocation7 + $0x368] ss:$16 sps:$4 sm:$0xff]   ;;  %v4197_v0 = vld [vmem:[#allocation7 + $0x18c] ss:$16 sps:$4 sm:$0xff]  }
 0x121   :  { %1895 = vmatprep.subr.bf16.mxu1 %v4110_v1  ;;  %v4200_v1 = vld [vmem:[#allocation7 + $0x38c] ss:$16 sps:$4 sm:$0xff]  }
 0x123   :  { %1855 = vmatpush1.bf16.msra.mxu0 %v4105_v2  ;;  %v4195_v2 = vld [vmem:[#allocation7 + $0x188] ss:$16 sps:$4 sm:$0xff]  }
 0x124   :  { %1896 = vmatpush1.bf16.msra.mxu1 %v4108_v3  ;;  %1856 = vmatprep.subr.bf16.mxu0 %v4113_v4  ;;  %v4198_v3 = vld [vmem:[#allocation7 + $0x388] ss:$16 sps:$4 sm:$0xff]   ;;  %v4203_v4 = vld [vmem:[#allocation7 + $0x1ac] ss:$16 sps:$4 sm:$0xff]  }
 0x125   :  { %1897 = vmatprep.subr.bf16.mxu1 %v4116_v5  ;;  %v4206_v5 = vld [vmem:[#allocation7 + $0x3ac] ss:$16 sps:$4 sm:$0xff]  }
 0x127   :  { %1857 = vmatpush1.bf16.msra.mxu0 %v4111_v6  ;;  %v4201_v6 = vld [vmem:[#allocation7 + $0x1a8] ss:$16 sps:$4 sm:$0xff]  }
 0x128   :  { %1898 = vmatpush1.bf16.msra.mxu1 %v4114_v7  ;;  %1858 = vmatprep.subr.bf16.mxu0 %v4119_v10  ;;  %v4204_v7 = vld [vmem:[#allocation7 + $0x3a8] ss:$16 sps:$4 sm:$0xff]   ;;  %v4209_v10 = vld [vmem:[#allocation7 + $0x1cc] ss:$16 sps:$4 sm:$0xff]  }
 0x129   :  { %1899 = vmatprep.subr.bf16.mxu1 %v4122_v11  ;;  %v4212_v11 = vld [vmem:[#allocation7 + $0x3cc] ss:$16 sps:$4 sm:$0xff]  }
 0x12b   :  { %1859 = vmatpush1.bf16.msra.mxu0 %v4117_v12  ;;  %v4207_v12 = vld [vmem:[#allocation7 + $0x1c8] ss:$16 sps:$4 sm:$0xff]  }
 0x12c   :  { %1900 = vmatpush1.bf16.msra.mxu1 %v4120_v13  ;;  %1910 = vmatprep.subr.bf16.mxu0 %v4125_v16  ;;  %v4210_v13 = vld [vmem:[#allocation7 + $0x3c8] ss:$16 sps:$4 sm:$0xff]  }
 0x12d   :  { %1951 = vmatprep.subr.bf16.mxu1 %v4128_v17  ;;  %v4213_v16 = vld [vmem:[#allocation7 + $0x1e8] ss:$16 sps:$4 sm:$0xff]  }
 0x12e   :  { %1861 = vmatmul.mubr.bf16.vlgmr.msra.gmra.mrb[8].mxu0 %v4767_v22  ;;  %v4216_v17 = vld [vmem:[#allocation7 + $0x3e8] ss:$16 sps:$4 sm:$0xff]  }
 0x12f   :  { %1902 = vmatmul.mubr.bf16.vlgmr.msra.gmra.mrb[8].mxu1 %v4769_v23  ;;  %1911 = vmatpush1.bf16.msra.mxu0 %v4123_v20  ;;  %v4221_v20 = vld [vmem:[#allocation10 + $0x4] ss:$16 sps:$4 sm:$0xff]  }
 0x130   :  { %1952 = vmatpush1.bf16.msra.mxu1 %v4126_v21  ;;  %1912 = vmatprep.subr.bf16.mxu0 %v4131_v24  ;;  %v4224_v21 = vld [vmem:[#allocation10 + $0xc] ss:$16 sps:$4 sm:$0xff]   ;;  %v4219_v24 = vld [vmem:[#allocation10] ss:$16 sps:$4 sm:$0xff]  }
 0x131   :  { %1953 = vmatprep.subr.bf16.mxu1 %v4134_v25  ;;  %1942 = vmatprep.mubr.bf16.mxu0 %v4759_v18  ;;  %v4158_v18 = vld [vmem:[#allocation7 + $0x2ac] ss:$16 sps:$4 sm:$0xff]   ;;  %v4222_v25 = vld [vmem:[#allocation10 + $0x8] ss:$16 sps:$4 sm:$0xff]  }
 0x132   :  { %1983 = vmatprep.mubr.bf16.mxu1 %v4761_v19  ;;  %v4153_v19 = vld [vmem:[#allocation7 + $0xa8] ss:$16 sps:$4 sm:$0xff]  }
 0x133   :  { %1913 = vmatpush1.bf16.msra.mxu0 %v4129_v26  ;;  %v4227_v26 = vld [vmem:[#allocation10 + $0x24] ss:$16 sps:$4 sm:$0xff]  }
 0x134   :  { %1954 = vmatpush1.bf16.msra.mxu1 %v4132_v8  ;;  %1914 = vmatprep.subr.bf16.mxu0 %v4137_v9  ;;  %v4230_v8 = vld [vmem:[#allocation10 + $0x2c] ss:$16 sps:$4 sm:$0xff]   ;;  %v4225_v9 = vld [vmem:[#allocation10 + $0x20] ss:$16 sps:$4 sm:$0xff]  }
 0x135   :  { %1955 = vmatprep.subr.bf16.mxu1 %v4140_v27  ;;  %v4228_v27 = vld [vmem:[#allocation10 + $0x28] ss:$16 sps:$4 sm:$0xff]  }
 0x137   :  { %1915 = vmatpush1.bf16.msra.mxu0 %v4135_v28  ;;  %v4233_v28 = vld [vmem:[#allocation10 + $0x44] ss:$16 sps:$4 sm:$0xff]  }
 0x138   :  { %1956 = vmatpush1.bf16.msra.mxu1 %v4138_v29  ;;  %1916 = vmatprep.subr.bf16.mxu0 %v4143_v30  ;;  %v4236_v29 = vld [vmem:[#allocation10 + $0x4c] ss:$16 sps:$4 sm:$0xff]   ;;  %v4231_v30 = vld [vmem:[#allocation10 + $0x40] ss:$16 sps:$4 sm:$0xff]  }
 0x139   :  { %1957 = vmatprep.subr.bf16.mxu1 %v4146_v31  ;;  %v4234_v31 = vld [vmem:[#allocation10 + $0x48] ss:$16 sps:$4 sm:$0xff]  }
 0x13b   :  { %1917 = vmatpush1.bf16.msra.mxu0 %v4141_v32  ;;  %v4239_v32 = vld [vmem:[#allocation10 + $0x64] ss:$16 sps:$4 sm:$0xff]  }
 0x13c   :  { %1958 = vmatpush1.bf16.msra.mxu1 %v4144_v33  ;;  %1918 = vmatprep.subr.bf16.mxu0 %v4149_v34  ;;  %v4242_v33 = vld [vmem:[#allocation10 + $0x6c] ss:$16 sps:$4 sm:$0xff]   ;;  %v4245_v34 = vld [vmem:[#allocation10 + $0x84] ss:$16 sps:$4 sm:$0xff]  }
 0x13d   :  { %1959 = vmatprep.subr.bf16.mxu1 %v4152_v35  ;;  %v4248_v35 = vld [vmem:[#allocation10 + $0x8c] ss:$16 sps:$4 sm:$0xff]  }
 0x13f   :  { %1919 = vmatpush1.bf16.msra.mxu0 %v4147_v36  ;;  %v4243_v36 = vld [vmem:[#allocation10 + $0x80] ss:$16 sps:$4 sm:$0xff]  }
 0x140   :  { %1960 = vmatpush1.bf16.msra.mxu1 %v4150_v37  ;;  %1920 = vmatprep.subr.bf16.mxu0 %v4155_v38  ;;  %v4246_v37 = vld [vmem:[#allocation10 + $0x88] ss:$16 sps:$4 sm:$0xff]   ;;  %v4251_v38 = vld [vmem:[#allocation10 + $0xa4] ss:$16 sps:$4 sm:$0xff]  }
 0x141   :  { %1961 = vmatprep.subr.bf16.mxu1 %v4158_v18  ;;  %v4254_v18 = vld [vmem:[#allocation10 + $0xac] ss:$16 sps:$4 sm:$0xff]  }
 0x143   :  { %1921 = vmatpush1.bf16.msra.mxu0 %v4153_v19  ;;  %v4249_v19 = vld [vmem:[#allocation10 + $0xa0] ss:$16 sps:$4 sm:$0xff]  }
 0x144   :  { %1962 = vmatpush1.bf16.msra.mxu1 %v4156_v39  ;;  %1922 = vmatprep.subr.bf16.mxu0 %v4161_v40  ;;  %v4252_v39 = vld [vmem:[#allocation10 + $0xa8] ss:$16 sps:$4 sm:$0xff]   ;;  %v4257_v40 = vld [vmem:[#allocation10 + $0xc4] ss:$16 sps:$4 sm:$0xff]  }
 0x145   :  { %1963 = vmatprep.subr.bf16.mxu1 %v4164_v41  ;;  %v4260_v41 = vld [vmem:[#allocation10 + $0xcc] ss:$16 sps:$4 sm:$0xff]  }
 0x147   :  { %1923 = vmatpush1.bf16.msra.mxu0 %v4159_v42 }
 0x148   :  { %1964 = vmatpush1.bf16.msra.mxu1 %v4162_v43  ;;  %1924 = vmatprep.subr.bf16.mxu0 %v4167_v44 }
 0x149   :  { %1965 = vmatprep.subr.bf16.mxu1 %v4170_v45 }
 0x14b   :  { %1925 = vmatpush1.bf16.msra.mxu0 %v4165_v46 }
 0x14c   :  { %1966 = vmatpush1.bf16.msra.mxu1 %v4168_v47  ;;  %1926 = vmatprep.subr.bf16.mxu0 %v4173_v48 }
 0x14d   :  { %1967 = vmatprep.subr.bf16.mxu1 %v4176_v49 }
 0x14f   :  { %1927 = vmatpush1.bf16.msra.mxu0 %v4171_v50  ;;  %v4255_v50 = vld [vmem:[#allocation10 + $0xc0] ss:$16 sps:$4 sm:$0xff]  }
 0x150   :  { %1968 = vmatpush1.bf16.msra.mxu1 %v4174_v51  ;;  %1928 = vmatprep.subr.bf16.mxu0 %v4179_v52  ;;  %v4258_v51 = vld [vmem:[#allocation10 + $0xc8] ss:$16 sps:$4 sm:$0xff]  }
 0x151   :  { %1969 = vmatprep.subr.bf16.mxu1 %v4182_v53 }
 0x153   :  { %1929 = vmatpush1.bf16.msra.mxu0 %v4177_v54  ;;  %v4263_v54 = vld [vmem:[#allocation10 + $0xe4] ss:$16 sps:$4 sm:$0xff]  }
 0x154   :  { %1970 = vmatpush1.bf16.msra.mxu1 %v4180_v55  ;;  %1930 = vmatprep.subr.bf16.mxu0 %v4185_v56  ;;  %v4266_v55 = vld [vmem:[#allocation10 + $0xec] ss:$16 sps:$4 sm:$0xff]   ;;  %v4261_v56 = vld [vmem:[#allocation10 + $0xe0] ss:$16 sps:$4 sm:$0xff]  }
 0x155   :  { %1971 = vmatprep.subr.bf16.mxu1 %v4188_v57  ;;  %v4264_v57 = vld [vmem:[#allocation10 + $0xe8] ss:$16 sps:$4 sm:$0xff]  }
 0x157   :  { %1931 = vmatpush1.bf16.msra.mxu0 %v4183_v58  ;;  %v4269_v58 = vld [vmem:[#allocation10 + $0x104] ss:$16 sps:$4 sm:$0xff]  }
 0x158   :  { %1972 = vmatpush1.bf16.msra.mxu1 %v4186_v59  ;;  %1932 = vmatprep.subr.bf16.mxu0 %v4191_v60  ;;  %v4272_v59 = vld [vmem:[#allocation10 + $0x10c] ss:$16 sps:$4 sm:$0xff]   ;;  %v4267_v60 = vld [vmem:[#allocation10 + $0x100] ss:$16 sps:$4 sm:$0xff]  }
 0x159   :  { %1973 = vmatprep.subr.bf16.mxu1 %v4194_v61  ;;  %v4270_v61 = vld [vmem:[#allocation10 + $0x108] ss:$16 sps:$4 sm:$0xff]  }
 0x15b   :  { %1933 = vmatpush1.bf16.msra.mxu0 %v4189_v62  ;;  %v4275_v62 = vld [vmem:[#allocation10 + $0x124] ss:$16 sps:$4 sm:$0xff]  }
 0x15c   :  { %1974 = vmatpush1.bf16.msra.mxu1 %v4192_v63  ;;  %1934 = vmatprep.subr.bf16.mxu0 %v4197_v0  ;;  %v4278_v63 = vld [vmem:[#allocation10 + $0x12c] ss:$16 sps:$4 sm:$0xff]   ;;  %v4273_v0 = vld [vmem:[#allocation10 + $0x120] ss:$16 sps:$4 sm:$0xff]  }
 0x15d   :  { %1975 = vmatprep.subr.bf16.mxu1 %v4200_v1  ;;  %v4276_v1 = vld [vmem:[#allocation10 + $0x128] ss:$16 sps:$4 sm:$0xff]  }
 0x15f   :  { %1935 = vmatpush1.bf16.msra.mxu0 %v4195_v2  ;;  %v4281_v2 = vld [vmem:[#allocation10 + $0x144] ss:$16 sps:$4 sm:$0xff]  }
 0x160   :  { %1976 = vmatpush1.bf16.msra.mxu1 %v4198_v3  ;;  %1936 = vmatprep.subr.bf16.mxu0 %v4203_v4  ;;  %v4284_v3 = vld [vmem:[#allocation10 + $0x14c] ss:$16 sps:$4 sm:$0xff]   ;;  %v4279_v4 = vld [vmem:[#allocation10 + $0x140] ss:$16 sps:$4 sm:$0xff]  }
 0x161   :  { %1977 = vmatprep.subr.bf16.mxu1 %v4206_v5  ;;  %v4282_v5 = vld [vmem:[#allocation10 + $0x148] ss:$16 sps:$4 sm:$0xff]  }
 0x163   :  { %1937 = vmatpush1.bf16.msra.mxu0 %v4201_v6  ;;  %v4287_v6 = vld [vmem:[#allocation10 + $0x164] ss:$16 sps:$4 sm:$0xff]  }
 0x164   :  { %1978 = vmatpush1.bf16.msra.mxu1 %v4204_v7  ;;  %1938 = vmatprep.subr.bf16.mxu0 %v4209_v10  ;;  %v4290_v7 = vld [vmem:[#allocation10 + $0x16c] ss:$16 sps:$4 sm:$0xff]   ;;  %v4285_v10 = vld [vmem:[#allocation10 + $0x160] ss:$16 sps:$4 sm:$0xff]  }
 0x165   :  { %1979 = vmatprep.subr.bf16.mxu1 %v4212_v11  ;;  %v4288_v11 = vld [vmem:[#allocation10 + $0x168] ss:$16 sps:$4 sm:$0xff]  }
 0x167   :  { %1939 = vmatpush1.bf16.msra.mxu0 %v4207_v12  ;;  %v4293_v12 = vld [vmem:[#allocation10 + $0x184] ss:$16 sps:$4 sm:$0xff]  }
 0x168   :  { %1980 = vmatpush1.bf16.msra.mxu1 %v4210_v13  ;;  %1940 = vmatprep.subr.bf16.mxu0 %v4215_v14  ;;  %v4296_v13 = vld [vmem:[#allocation10 + $0x18c] ss:$16 sps:$4 sm:$0xff]   ;;  %v4291_v14 = vld [vmem:[#allocation10 + $0x180] ss:$16 sps:$4 sm:$0xff]  }
 0x169   :  { %1981 = vmatprep.subr.bf16.mxu1 %v4218_v15  ;;  %v4294_v15 = vld [vmem:[#allocation10 + $0x188] ss:$16 sps:$4 sm:$0xff]  }
 0x16b   :  { %1941 = vmatpush1.bf16.msra.mxu0 %v4213_v16  ;;  %v4299_v16 = vld [vmem:[#allocation10 + $0x1a4] ss:$16 sps:$4 sm:$0xff]  }
 0x16c   :  { %1982 = vmatpush1.bf16.msra.mxu1 %v4216_v17  ;;  %2816 = vmatprep.subr.bf16.mxu0 %v4221_v20  ;;  %v4302_v17 = vld [vmem:[#allocation10 + $0x1ac] ss:$16 sps:$4 sm:$0xff]   ;;  %v4297_v20 = vld [vmem:[#allocation10 + $0x1a0] ss:$16 sps:$4 sm:$0xff]  }
 0x16d   :  { %2898 = vmatprep.subr.bf16.mxu1 %v4224_v21  ;;  %v4300_v21 = vld [vmem:[#allocation10 + $0x1a8] ss:$16 sps:$4 sm:$0xff]  }
 0x16e   :  { %1943 = vmatmul.mubr.bf16.vlgmr.msra.gmra.mrb[12].mxu0 %v4767_v22  ;;  %v4237_v22 = vld [vmem:[#allocation10 + $0x60] ss:$16 sps:$4 sm:$0xff]  }
 0x16f   :  { %1984 = vmatmul.mubr.bf16.vlgmr.msra.gmra.mrb[12].mxu1 %v4769_v23  ;;  %2817 = vmatpush1.bf16.msra.mxu0 %v4219_v24  ;;  %v4240_v23 = vld [vmem:[#allocation10 + $0x68] ss:$16 sps:$4 sm:$0xff]   ;;  %v4305_v24 = vld [vmem:[#allocation10 + $0x1c4] ss:$16 sps:$4 sm:$0xff]  }
 0x170   :  { %2899 = vmatpush1.bf16.msra.mxu1 %v4222_v25  ;;  %2818 = vmatprep.subr.bf16.mxu0 %v4227_v26  ;;  %v4308_v25 = vld [vmem:[#allocation10 + $0x1cc] ss:$16 sps:$4 sm:$0xff]   ;;  %v4303_v26 = vld [vmem:[#allocation10 + $0x1c0] ss:$16 sps:$4 sm:$0xff]  }
 0x171   :  { %2900 = vmatprep.subr.bf16.mxu1 %v4230_v8  ;;  %v4306_v8 = vld [vmem:[#allocation10 + $0x1c8] ss:$16 sps:$4 sm:$0xff]  }
 0x173   :  { %2819 = vmatpush1.bf16.msra.mxu0 %v4225_v9  ;;  %v4311_v9 = vld [vmem:[#allocation10 + $0x1e4] ss:$16 sps:$4 sm:$0xff]  }
 0x174   :  { %2901 = vmatpush1.bf16.msra.mxu1 %v4228_v27  ;;  %2820 = vmatprep.subr.bf16.mxu0 %v4233_v28  ;;  %v4314_v27 = vld [vmem:[#allocation10 + $0x1ec] ss:$16 sps:$4 sm:$0xff]   ;;  %v4309_v28 = vld [vmem:[#allocation10 + $0x1e0] ss:$16 sps:$4 sm:$0xff]  }
 0x175   :  { %2902 = vmatprep.subr.bf16.mxu1 %v4236_v29  ;;  %v4312_v29 = vld [vmem:[#allocation10 + $0x1e8] ss:$16 sps:$4 sm:$0xff]  }
 0x177   :  { %2821 = vmatpush1.bf16.msra.mxu0 %v4231_v30  ;;  %v4317_v30 = vld [vmem:[#allocation10 + $0x204] ss:$16 sps:$4 sm:$0xff]  }
 0x178   :  { %2903 = vmatpush1.bf16.msra.mxu1 %v4234_v31  ;;  %2822 = vmatprep.subr.bf16.mxu0 %v4239_v32  ;;  %v4320_v31 = vld [vmem:[#allocation10 + $0x20c] ss:$16 sps:$4 sm:$0xff]  }
 0x179   :  { %2904 = vmatprep.subr.bf16.mxu1 %v4242_v33 }
 0x17b   :  { %2823 = vmatpush1.bf16.msra.mxu0 %v4237_v22 }
 0x17c   :  { %2905 = vmatpush1.bf16.msra.mxu1 %v4240_v23  ;;  %2824 = vmatprep.subr.bf16.mxu0 %v4245_v34 }
 0x17d   :  { %2906 = vmatprep.subr.bf16.mxu1 %v4248_v35 }
 0x17f   :  { %2825 = vmatpush1.bf16.msra.mxu0 %v4243_v36 }
 0x180   :  { %2907 = vmatpush1.bf16.msra.mxu1 %v4246_v37  ;;  %2826 = vmatprep.subr.bf16.mxu0 %v4251_v38 }
 0x181   :  { %2908 = vmatprep.subr.bf16.mxu1 %v4254_v18  ;;  %v1058_v42 = vpop.f32.mrb[0].mxu0 }
 0x182   :  { %v1099_v43 = vpop.f32.mrb[0].mxu1  ;;  %v1060_v45 = vpop.f32.mrb[1].mxu0 }
 0x183   :  { %v4777_v44 = vadd.f32 %v1099_v43, %v1058_v42  ;;  %v1101_v46 = vpop.f32.mrb[1].mxu1  ;;  %v1062_v48 = vpop.f32.mrb[2].mxu0  ;;  %2827 = vmatpush1.bf16.msra.mxu0 %v4249_v19  ;;  %v1994_v19 = vlaneseq }
 0x184   :  { %v4779_v47 = vadd.f32 %v1101_v46, %v1060_v45  ;;  %v1103_v49 = vpop.f32.mrb[2].mxu1  ;;  %2909 = vmatpush1.bf16.msra.mxu1 %v4252_v39  ;;  %v1063_v52 = vpop.f32.mrb[3].mxu0  ;;  %2828 = vmatprep.subr.bf16.mxu0 %v4257_v40 }
 0x185   :  { %v1104_v53 = vpop.f32.mrb[3].mxu1  ;;  %2910 = vmatprep.subr.bf16.mxu1 %v4260_v41  ;;  %v4785_v39 = vshrl.u32 %v1994_v19, 7  ;;  %v4791_v41 = vld [vmem:[%s4842_s4] sm:$0xf]  ;;  %v4372_v19 = vld [vmem:[#allocation10 + $0x328] ss:$16 sps:$4 sm:$0xff]  }
 0x187   :  { %2829 = vmatpush1.bf16.msra.mxu0 %v4255_v50  ;;  %v1996_v40 = vsub.s32 0, %v4785_v39  ;;  %v2000_v42 = vsub.s32 1, %v4785_v39 }
 0x188   :  { %2911 = vmatpush1.bf16.msra.mxu1 %v4258_v51  ;;  %2830 = vmatprep.subr.bf16.mxu0 %v4263_v54 }
 0x189   :  { %2912 = vmatprep.subr.bf16.mxu1 %v4266_v55  ;;  %v1997_v48 = vrot.slane %v4791_v41, %v1996_v40  ;;  %v2001_v52 = vrot.slane %v4791_v41, %v2000_v42 }
 0x18b   :  { %2831 = vmatpush1.bf16.msra.mxu0 %v4261_v56 }
 0x18c   :  { %2913 = vmatpush1.bf16.msra.mxu1 %v4264_v57  ;;  %2832 = vmatprep.subr.bf16.mxu0 %v4269_v58 }
 0x18d   :  { %2914 = vmatprep.subr.bf16.mxu1 %v4272_v59 }
 0x18f   :  { %2833 = vmatpush1.bf16.msra.mxu0 %v4267_v60 }
 0x190   :  { %2915 = vmatpush1.bf16.msra.mxu1 %v4270_v61  ;;  %2834 = vmatprep.subr.bf16.mxu0 %v4275_v62 }
 0x191   :  { %2916 = vmatprep.subr.bf16.mxu1 %v4278_v63  ;;  %v4315_v63 = vld [vmem:[#allocation10 + $0x200] ss:$16 sps:$4 sm:$0xff]  }
 0x193   :  { %2835 = vmatpush1.bf16.msra.mxu0 %v4273_v0  ;;  %v4318_v0 = vld [vmem:[#allocation10 + $0x208] ss:$16 sps:$4 sm:$0xff]  }
 0x194   :  { %2917 = vmatpush1.bf16.msra.mxu1 %v4276_v1  ;;  %2836 = vmatprep.subr.bf16.mxu0 %v4281_v2  ;;  %v4323_v2 = vld [vmem:[#allocation10 + $0x224] ss:$16 sps:$4 sm:$0xff]  }
 0x195   :  { %2918 = vmatprep.subr.bf16.mxu1 %v4284_v3  ;;  %v4321_v3 = vld [vmem:[#allocation10 + $0x220] ss:$16 sps:$4 sm:$0xff]  }
 0x197   :  { %2837 = vmatpush1.bf16.msra.mxu0 %v4279_v4  ;;  %v4324_v4 = vld [vmem:[#allocation10 + $0x228] ss:$16 sps:$4 sm:$0xff]  }
 0x198   :  { %2919 = vmatpush1.bf16.msra.mxu1 %v4282_v5  ;;  %2838 = vmatprep.subr.bf16.mxu0 %v4287_v6  ;;  %v4329_v5 = vld [vmem:[#allocation10 + $0x244] ss:$16 sps:$4 sm:$0xff]   ;;  %v4332_v6 = vld [vmem:[#allocation10 + $0x24c] ss:$16 sps:$4 sm:$0xff]  }
 0x199   :  { %2920 = vmatprep.subr.bf16.mxu1 %v4290_v7  ;;  %v4327_v7 = vld [vmem:[#allocation10 + $0x240] ss:$16 sps:$4 sm:$0xff]  }
 0x19b   :  { %2839 = vmatpush1.bf16.msra.mxu0 %v4285_v10  ;;  %v4330_v10 = vld [vmem:[#allocation10 + $0x248] ss:$16 sps:$4 sm:$0xff]  }
 0x19c   :  { %2921 = vmatpush1.bf16.msra.mxu1 %v4288_v11  ;;  %2840 = vmatprep.subr.bf16.mxu0 %v4293_v12  ;;  %v4335_v11 = vld [vmem:[#allocation10 + $0x264] ss:$16 sps:$4 sm:$0xff]   ;;  %v4338_v12 = vld [vmem:[#allocation10 + $0x26c] ss:$16 sps:$4 sm:$0xff]  }
 0x19d   :  { %2922 = vmatprep.subr.bf16.mxu1 %v4296_v13  ;;  %v4333_v13 = vld [vmem:[#allocation10 + $0x260] ss:$16 sps:$4 sm:$0xff]  }
 0x19f   :  { %2841 = vmatpush1.bf16.msra.mxu0 %v4291_v14  ;;  %v4336_v14 = vld [vmem:[#allocation10 + $0x268] ss:$16 sps:$4 sm:$0xff]  }
 0x1a0   :  { %2923 = vmatpush1.bf16.msra.mxu1 %v4294_v15  ;;  %2842 = vmatprep.subr.bf16.mxu0 %v4299_v16  ;;  %v4341_v15 = vld [vmem:[#allocation10 + $0x284] ss:$16 sps:$4 sm:$0xff]   ;;  %v4344_v16 = vld [vmem:[#allocation10 + $0x28c] ss:$16 sps:$4 sm:$0xff]  }
 0x1a1   :  { %2924 = vmatprep.subr.bf16.mxu1 %v4302_v17  ;;  %v4339_v17 = vld [vmem:[#allocation10 + $0x280] ss:$16 sps:$4 sm:$0xff]  }
 0x1a3   :  { %2843 = vmatpush1.bf16.msra.mxu0 %v4297_v20  ;;  %v4342_v20 = vld [vmem:[#allocation10 + $0x288] ss:$16 sps:$4 sm:$0xff]  }
 0x1a4   :  { %2925 = vmatpush1.bf16.msra.mxu1 %v4300_v21  ;;  %2844 = vmatprep.subr.bf16.mxu0 %v4305_v24  ;;  %v4347_v21 = vld [vmem:[#allocation10 + $0x2a4] ss:$16 sps:$4 sm:$0xff]   ;;  %v4350_v24 = vld [vmem:[#allocation10 + $0x2ac] ss:$16 sps:$4 sm:$0xff]  }
 0x1a5   :  { %2926 = vmatprep.subr.bf16.mxu1 %v4308_v25  ;;  %v4345_v25 = vld [vmem:[#allocation10 + $0x2a0] ss:$16 sps:$4 sm:$0xff]  }
 0x1a7   :  { %2845 = vmatpush1.bf16.msra.mxu0 %v4303_v26  ;;  %v4348_v26 = vld [vmem:[#allocation10 + $0x2a8] ss:$16 sps:$4 sm:$0xff]  }
 0x1a8   :  { %2927 = vmatpush1.bf16.msra.mxu1 %v4306_v8  ;;  %2846 = vmatprep.subr.bf16.mxu0 %v4311_v9  ;;  %v4353_v8 = vld [vmem:[#allocation10 + $0x2c4] ss:$16 sps:$4 sm:$0xff]   ;;  %v4356_v9 = vld [vmem:[#allocation10 + $0x2cc] ss:$16 sps:$4 sm:$0xff]  }
 0x1a9   :  { %2928 = vmatprep.subr.bf16.mxu1 %v4314_v27  ;;  %v4351_v27 = vld [vmem:[#allocation10 + $0x2c0] ss:$16 sps:$4 sm:$0xff]  }
 0x1ab   :  { %2847 = vmatpush1.bf16.msra.mxu0 %v4309_v28  ;;  %v4354_v28 = vld [vmem:[#allocation10 + $0x2c8] ss:$16 sps:$4 sm:$0xff]  }
 0x1ac   :  { %2929 = vmatpush1.bf16.msra.mxu1 %v4312_v29  ;;  %2857 = vmatprep.subr.bf16.mxu0 %v4317_v30  ;;  %v4359_v29 = vld [vmem:[#allocation10 + $0x2e4] ss:$16 sps:$4 sm:$0xff]   ;;  %v4362_v30 = vld [vmem:[#allocation10 + $0x2ec] ss:$16 sps:$4 sm:$0xff]  }
 0x1ad   :  { %2939 = vmatprep.subr.bf16.mxu1 %v4320_v31  ;;  %v4357_v31 = vld [vmem:[#allocation10 + $0x2e0] ss:$16 sps:$4 sm:$0xff]  }
 0x1c1   :  { %v1140_v32 = vpop.f32.mrb[4].mxu0 }
 0x1c2   :  { %v1181_v33 = vpop.f32.mrb[4].mxu1  ;;  %v1142_v23 = vpop.f32.mrb[5].mxu0 }
 0x1c3   :  { %v4781_v22 = vadd.f32 %v1181_v33, %v1140_v32  ;;  %v1183_v34 = vpop.f32.mrb[5].mxu1  ;;  %v1144_v36 = vpop.f32.mrb[6].mxu0  ;;  %v4360_v32 = vld [vmem:[#allocation10 + $0x2e8] ss:$16 sps:$4 sm:$0xff]   ;;  %v4365_v33 = vld [vmem:[#allocation10 + $0x304] ss:$16 sps:$4 sm:$0xff]  }
 0x1c4   :  { %v4783_v35 = vadd.f32 %v1183_v34, %v1142_v23  ;;  %v1185_v37 = vpop.f32.mrb[6].mxu1  ;;  %v1145_v38 = vpop.f32.mrb[7].mxu0  ;;  %v4368_v23 = vld [vmem:[#allocation10 + $0x30c] ss:$16 sps:$4 sm:$0xff]   ;;  %v4363_v34 = vld [vmem:[#allocation10 + $0x300] ss:$16 sps:$4 sm:$0xff]  }
 0x1c5   :  { %v1186_v18 = vpop.f32.mrb[7].mxu1  ;;  %v4366_v36 = vld [vmem:[#allocation10 + $0x308] ss:$16 sps:$4 sm:$0xff]   ;;  %v4371_v37 = vld [vmem:[#allocation10 + $0x324] ss:$16 sps:$4 sm:$0xff]  }
 0x1c6   :  { %v4374_v38 = vld [vmem:[#allocation10 + $0x32c] ss:$16 sps:$4 sm:$0xff]   ;;  %v4369_v18 = vld [vmem:[#allocation10 + $0x320] ss:$16 sps:$4 sm:$0xff]  }
 0x201   :  { %v1862_v43 = vpop.f32.mrb[8].mxu0 }
 0x202   :  { %v1903_v45 = vpop.f32.mrb[8].mxu1  ;;  %v1863_v46 = vadd.f32 %v1862_v43, %v4777_v44  ;;  %v1864_v49 = vpop.f32.mrb[9].mxu0  ;;  %v4377_v43 = vld [vmem:[#allocation10 + $0x344] ss:$16 sps:$4 sm:$0xff]  }
 0x203   :  { %v1905_v50 = vpop.f32.mrb[9].mxu1  ;;  %v1865_v51 = vadd.f32 %v1864_v49, %v4779_v47  ;;  %v1866_v53 = vpop.f32.mrb[10].mxu0  ;;  %v4326_v47 = vld [vmem:[#allocation10 + $0x22c] ss:$16 sps:$4 sm:$0xff]   ;;  %v4383_v49 = vld [vmem:[#allocation10 + $0x364] ss:$16 sps:$4 sm:$0xff]  }
 0x204   :  { %v1907_v54 = vpop.f32.mrb[10].mxu1  ;;  %v1904_v55 = vadd.f32 %v1903_v45, %v1863_v46  ;;  %v1867_v56 = vpop.f32.mrb[11].mxu0  ;;  %v4380_v45 = vld [vmem:[#allocation10 + $0x34c] ss:$16 sps:$4 sm:$0xff]   ;;  %v4375_v46 = vld [vmem:[#allocation10 + $0x340] ss:$16 sps:$4 sm:$0xff]  }
 0x205   :  { %v1908_v57 = vpop.f32.mrb[11].mxu1  ;;  %v1906_v58 = vadd.f32 %v1905_v50, %v1865_v51  ;;  %v4386_v50 = vld [vmem:[#allocation10 + $0x36c] ss:$16 sps:$4 sm:$0xff]   ;;  %v4381_v51 = vld [vmem:[#allocation10 + $0x360] ss:$16 sps:$4 sm:$0xff]  }
 0x206   :  { %v2014_v59 = vadd.f32 %v1997_v48, %v1904_v55  ;;  %v4378_v48 = vld [vmem:[#allocation10 + $0x348] ss:$16 sps:$4 sm:$0xff]   ;;  %v4389_v53 = vld [vmem:[#allocation10 + $0x384] ss:$16 sps:$4 sm:$0xff]   ;;  %v4392_v54 = vld [vmem:[#allocation10 + $0x38c] ss:$16 sps:$4 sm:$0xff]  }
 0x207   :  { %v2015_v44 = vadd.f32 %v2001_v52, %v1906_v58  ;;  %v4384_v52 = vld [vmem:[#allocation10 + $0x368] ss:$16 sps:$4 sm:$0xff]   ;;  %v4387_v55 = vld [vmem:[#allocation10 + $0x380] ss:$16 sps:$4 sm:$0xff]   ;;  %v4395_v57 = vld [vmem:[#allocation10 + $0x3a4] ss:$16 sps:$4 sm:$0xff]  }
 0x208   :  { %v2018_v60 = vmax.f32 %v2014_v59, 0.0  ;;  %v4390_v56 = vld [vmem:[#allocation10 + $0x388] ss:$16 sps:$4 sm:$0xff]   ;;  %v4398_v58 = vld [vmem:[#allocation10 + $0x3ac] ss:$16 sps:$4 sm:$0xff]   ;;  %v2004_v59 = vsub.s32 2, %v4785_v39 }
 0x209   :  { %v2019_v61 = vmax.f32 %v2015_v44, 0.0  ;;  %v2008_v44 = vsub.s32 3, %v4785_v39 }
 0x20a   :  { %v2022_v1 = vpack.c.bf16 %v2018_v60, %v2018_v60  ;;  %v4393_v60 = vld [vmem:[#allocation10 + $0x3a0] ss:$16 sps:$4 sm:$0xff]  }
 0x20b   :  { %v2023_v62 = vpack.c.bf16 %v2019_v61, %v2019_v61  ;;  %v4396_v61 = vld [vmem:[#allocation10 + $0x3a8] ss:$16 sps:$4 sm:$0xff]  }
 0x20d   :  { %2848 = vmatprep.mubr.bf16.mxu0 %v2023_v62  ;;  %2930 = vmatprep.mubr.bf16.mxu1 %v2023_v62  ;;  %v4401_v62 = vld [vmem:[#allocation10 + $0x3c4] ss:$16 sps:$4 sm:$0xff]  }
 0x20e   :  { %2849 = vmatmul.mubr.bf16.vlgmr.msra.gmra.mrb[16].mxu0 %v2022_v1  ;;  %2931 = vmatmul.mubr.bf16.vlgmr.msra.gmra.mrb[16].mxu1 %v2022_v1 }
 0x20f   :  { %2858 = vmatpush1.bf16.msra.mxu0 %v4315_v63  ;;  %2940 = vmatpush1.bf16.msra.mxu1 %v4318_v0  ;;  %v4404_v63 = vld [vmem:[#allocation10 + $0x3cc] ss:$16 sps:$4 sm:$0xff]  }
 0x210   :  { %2859 = vmatprep.subr.bf16.mxu0 %v4323_v2  ;;  %2941 = vmatprep.subr.bf16.mxu1 %v4326_v47  ;;  %v2005_v47 = vrot.slane %v4791_v41, %v2004_v59 }
 0x213   :  { %2860 = vmatpush1.bf16.msra.mxu0 %v4321_v3  ;;  %2942 = vmatpush1.bf16.msra.mxu1 %v4324_v4 }
 0x214   :  { %2861 = vmatprep.subr.bf16.mxu0 %v4329_v5  ;;  %2943 = vmatprep.subr.bf16.mxu1 %v4332_v6  ;;  %v2009_v6 = vrot.slane %v4791_v41, %v2008_v44  ;;  %v4408_v41 = vld [vmem:[#allocation10 + $0x3e8] ss:$16 sps:$4 sm:$0xff]  }
 0x217   :  { %2862 = vmatpush1.bf16.msra.mxu0 %v4327_v7  ;;  %2944 = vmatpush1.bf16.msra.mxu1 %v4330_v10 }
 0x218   :  { %2863 = vmatprep.subr.bf16.mxu0 %v4335_v11  ;;  %2945 = vmatprep.subr.bf16.mxu1 %v4338_v12  ;;  %v4399_v11 = vld [vmem:[#allocation10 + $0x3c0] ss:$16 sps:$4 sm:$0xff]   ;;  %v4402_v12 = vld [vmem:[#allocation10 + $0x3c8] ss:$16 sps:$4 sm:$0xff]  }
 0x21b   :  { %2864 = vmatpush1.bf16.msra.mxu0 %v4333_v13  ;;  %2946 = vmatpush1.bf16.msra.mxu1 %v4336_v14 }
 0x21c   :  { %2865 = vmatprep.subr.bf16.mxu0 %v4341_v15  ;;  %2947 = vmatprep.subr.bf16.mxu1 %v4344_v16  ;;  %v4407_v15 = vld [vmem:[#allocation10 + $0x3e4] ss:$16 sps:$4 sm:$0xff]   ;;  %v4410_v16 = vld [vmem:[#allocation10 + $0x3ec] ss:$16 sps:$4 sm:$0xff]  }
 0x21f   :  { %2866 = vmatpush1.bf16.msra.mxu0 %v4339_v17  ;;  %2948 = vmatpush1.bf16.msra.mxu1 %v4342_v20 }
 0x220   :  { %2867 = vmatprep.subr.bf16.mxu0 %v4347_v21  ;;  %2949 = vmatprep.subr.bf16.mxu1 %v4350_v24  ;;  %v4405_v21 = vld [vmem:[#allocation10 + $0x3e0] ss:$16 sps:$4 sm:$0xff]  }
 0x223   :  { %2868 = vmatpush1.bf16.msra.mxu0 %v4345_v25  ;;  %2950 = vmatpush1.bf16.msra.mxu1 %v4348_v26  ;;  %v4411_v25 = vld [vmem:[#allocation11 + $0x40] sm:$0xff]  }
 0x224   :  { %2869 = vmatprep.subr.bf16.mxu0 %v4353_v8  ;;  %2951 = vmatprep.subr.bf16.mxu1 %v4356_v9  ;;  %v4412_v26 = vld [vmem:[#allocation11 + $0xc0] sm:$0xff]  }
 0x227   :  { %2870 = vmatpush1.bf16.msra.mxu0 %v4351_v27  ;;  %2952 = vmatpush1.bf16.msra.mxu1 %v4354_v28  ;;  %v4413_v27 = vld [vmem:[#allocation11] sm:$0xff]  }
 0x228   :  { %2871 = vmatprep.subr.bf16.mxu0 %v4359_v29  ;;  %2953 = vmatprep.subr.bf16.mxu1 %v4362_v30  ;;  %v4414_v28 = vld [vmem:[#allocation11 + $0x80] sm:$0xff]   ;;  %v4415_v30 = vld [vmem:[#allocation11 + $0x48] sm:$0xff]  }
 0x22b   :  { %2872 = vmatpush1.bf16.msra.mxu0 %v4357_v31  ;;  %2954 = vmatpush1.bf16.msra.mxu1 %v4360_v32  ;;  %v4416_v31 = vld [vmem:[#allocation11 + $0xc8] sm:$0xff]  }
 0x22c   :  { %2873 = vmatprep.subr.bf16.mxu0 %v4365_v33  ;;  %2955 = vmatprep.subr.bf16.mxu1 %v4368_v23  ;;  %v4417_v32 = vld [vmem:[#allocation11 + $0x8] sm:$0xff]   ;;  %v4419_v23 = vld [vmem:[#allocation11 + $0x50] sm:$0xff]  }
 0x22d   :  { %v4418_v33 = vld [vmem:[#allocation11 + $0x88] sm:$0xff]  }
 0x22f   :  { %2874 = vmatpush1.bf16.msra.mxu0 %v4363_v34  ;;  %2956 = vmatpush1.bf16.msra.mxu1 %v4366_v36  ;;  %v4420_v34 = vld [vmem:[#allocation11 + $0xd0] sm:$0xff]  }
 0x230   :  { %2875 = vmatprep.subr.bf16.mxu0 %v4371_v37  ;;  %2957 = vmatprep.subr.bf16.mxu1 %v4374_v38  ;;  %v4421_v36 = vld [vmem:[#allocation11 + $0x10] sm:$0xff]   ;;  %v4423_v38 = vld [vmem:[#allocation11 + $0x58] sm:$0xff]  }
 0x231   :  { %v4422_v37 = vld [vmem:[#allocation11 + $0x90] sm:$0xff]  }
 0x233   :  { %2876 = vmatpush1.bf16.msra.mxu0 %v4369_v18  ;;  %2958 = vmatpush1.bf16.msra.mxu1 %v4372_v19  ;;  %v4424_v18 = vld [vmem:[#allocation11 + $0xd8] sm:$0xff]  }
 0x234   :  { %2877 = vmatprep.subr.bf16.mxu0 %v4377_v43  ;;  %2959 = vmatprep.subr.bf16.mxu1 %v4380_v45  ;;  %v4425_v19 = vld [vmem:[#allocation11 + $0x18] sm:$0xff]   ;;  %v4427_v45 = vld [vmem:[#allocation11 + $0x60] sm:$0xff]  }
 0x235   :  { %v4426_v43 = vld [vmem:[#allocation11 + $0x98] sm:$0xff]  }
 0x237   :  { %2878 = vmatpush1.bf16.msra.mxu0 %v4375_v46  ;;  %2960 = vmatpush1.bf16.msra.mxu1 %v4378_v48  ;;  %v4428_v46 = vld [vmem:[#allocation11 + $0xe0] sm:$0xff]  }
 0x238   :  { %2879 = vmatprep.subr.bf16.mxu0 %v4383_v49  ;;  %2961 = vmatprep.subr.bf16.mxu1 %v4386_v50  ;;  %v4429_v48 = vld [vmem:[#allocation11 + $0x20] sm:$0xff]   ;;  %v4431_v50 = vld [vmem:[#allocation11 + $0x68] sm:$0xff]  }
 0x239   :  { %v4430_v49 = vld [vmem:[#allocation11 + $0xa0] sm:$0xff]  }
 0x23b   :  { %2880 = vmatpush1.bf16.msra.mxu0 %v4381_v51  ;;  %2962 = vmatpush1.bf16.msra.mxu1 %v4384_v52  ;;  %v4432_v51 = vld [vmem:[#allocation11 + $0xe8] sm:$0xff]  }
 0x23c   :  { %2881 = vmatprep.subr.bf16.mxu0 %v4389_v53  ;;  %2963 = vmatprep.subr.bf16.mxu1 %v4392_v54  ;;  %v4433_v52 = vld [vmem:[#allocation11 + $0x28] sm:$0xff]   ;;  %v4435_v54 = vld [vmem:[#allocation11 + $0x70] sm:$0xff]  }
 0x23d   :  { %v4434_v53 = vld [vmem:[#allocation11 + $0xa8] sm:$0xff]  }
 0x23f   :  { %2882 = vmatpush1.bf16.msra.mxu0 %v4387_v55  ;;  %2964 = vmatpush1.bf16.msra.mxu1 %v4390_v56  ;;  %v4436_v55 = vld [vmem:[#allocation11 + $0xf0] sm:$0xff]  }
 0x240   :  { %2883 = vmatprep.subr.bf16.mxu0 %v4395_v57  ;;  %2965 = vmatprep.subr.bf16.mxu1 %v4398_v58  ;;  %v4437_v56 = vld [vmem:[#allocation11 + $0x30] sm:$0xff]   ;;  %v4439_v58 = vld [vmem:[#allocation11 + $0x78] sm:$0xff]  }
 0x241   :  { %v1944_v0 = vpop.f32.mrb[12].mxu0  ;;  %v4438_v57 = vld [vmem:[#allocation11 + $0xb0] sm:$0xff]  }
 0x242   :  { %v1985_v1 = vpop.f32.mrb[12].mxu1  ;;  %v1945_v2 = vadd.f32 %v1944_v0, %v4781_v22  ;;  %v1946_v3 = vpop.f32.mrb[13].mxu0 }
 0x243   :  { %v1987_v4 = vpop.f32.mrb[13].mxu1  ;;  %v1947_v5 = vadd.f32 %v1946_v3, %v4783_v35  ;;  %v1948_v7 = vpop.f32.mrb[14].mxu0  ;;  %2884 = vmatpush1.bf16.msra.mxu0 %v4393_v60  ;;  %2966 = vmatpush1.bf16.msra.mxu1 %v4396_v61  ;;  %v4440_v60 = vld [vmem:[#allocation11 + $0xf8] sm:$0xff]  }
 0x244   :  { %v1989_v10 = vpop.f32.mrb[14].mxu1  ;;  %v1986_v13 = vadd.f32 %v1985_v1, %v1945_v2  ;;  %v1949_v22 = vpop.f32.mrb[15].mxu0  ;;  %2885 = vmatprep.subr.bf16.mxu0 %v4401_v62  ;;  %2967 = vmatprep.subr.bf16.mxu1 %v4404_v63  ;;  %v4441_v61 = vld [vmem:[#allocation11 + $0x38] sm:$0xff]   ;;  %v2154_v63 = vld [vmem:[%s4844_s6] sm:$0xf] }
 0x245   :  { %v1990_v14 = vpop.f32.mrb[15].mxu1  ;;  %v1988_v17 = vadd.f32 %v1987_v4, %v1947_v5  ;;  %v4442_v62 = vld [vmem:[#allocation11 + $0xb8] sm:$0xff]   ;;  %v2159_v0 = vrot.slane %v2154_v63, %v1996_v40  ;;  %v2167_v1 = vrot.slane %v2154_v63, %v2004_v59  ;;  %v2163_v2 = vrot.slane %v2154_v63, %v2000_v42 }
 0x246   :  { %v2016_v20 = vadd.f32 %v2005_v47, %v1986_v13  ;;  %v2171_v47 = vrot.slane %v2154_v63, %v2008_v44 }
 0x247   :  { %v2017_v35 = vadd.f32 %v2009_v6, %v1988_v17  ;;  %2886 = vmatpush1.bf16.msra.mxu0 %v4399_v11  ;;  %2968 = vmatpush1.bf16.msra.mxu1 %v4402_v12 }
 0x248   :  { %v2020_v24 = vmax.f32 %v2016_v20, 0.0  ;;  %2887 = vmatprep.subr.bf16.mxu0 %v4407_v15  ;;  %2969 = vmatprep.subr.bf16.mxu1 %v4410_v16 }
 0x249   :  { %v2021_v8 = vmax.f32 %v2017_v35, 0.0 }
 0x24a   :  { %v2024_v29 = vpack.c.bf16 %v2020_v24, %v2020_v24 }
 0x24b   :  { %v2025_v9 = vpack.c.bf16 %v2021_v8, %v2021_v8  ;;  %2888 = vmatpush1.bf16.msra.mxu0 %v4405_v21  ;;  %2970 = vmatpush1.bf16.msra.mxu1 %v4408_v41  ;;  %v3735_v41 = vld [vmem:[%s4846_s8] ss:$0 sm:$0xff] }
 0x24c   :  { %3768 = vmatprep.subr.bf16.mxu0 %v4411_v25  ;;  %3790 = vmatprep.subr.bf16.mxu1 %v4412_v26 }
 0x24d   :  { %2889 = vmatprep.mubr.bf16.mxu0 %v2025_v9  ;;  %2971 = vmatprep.mubr.bf16.mxu1 %v2025_v9 }
 0x24e   :  { %2890 = vmatmul.mubr.bf16.vlgmr.msra.gmra.mrb[16].mxu0 %v2024_v29  ;;  %2972 = vmatmul.mubr.bf16.vlgmr.msra.gmra.mrb[16].mxu1 %v2024_v29 }
 0x24f   :  { %3769 = vmatpush3.bf16.msra.mxu0 %v4413_v27  ;;  %3791 = vmatpush3.bf16.msra.mxu1 %v4414_v28 }
 0x250   :  { %3770 = vmatprep.subr.bf16.mxu0 %v4415_v30  ;;  %3792 = vmatprep.subr.bf16.mxu1 %v4416_v31 }
 0x253   :  { %3771 = vmatpush3.bf16.msra.mxu0 %v4417_v32  ;;  %3793 = vmatpush3.bf16.msra.mxu1 %v4418_v33 }
 0x254   :  { %3772 = vmatprep.subr.bf16.mxu0 %v4419_v23  ;;  %3794 = vmatprep.subr.bf16.mxu1 %v4420_v34 }
 0x257   :  { %3773 = vmatpush3.bf16.msra.mxu0 %v4421_v36  ;;  %3795 = vmatpush3.bf16.msra.mxu1 %v4422_v37 }
 0x258   :  { %3774 = vmatprep.subr.bf16.mxu0 %v4423_v38  ;;  %3796 = vmatprep.subr.bf16.mxu1 %v4424_v18 }
 0x25b   :  { %3775 = vmatpush3.bf16.msra.mxu0 %v4425_v19  ;;  %3797 = vmatpush3.bf16.msra.mxu1 %v4426_v43 }
 0x25c   :  { %3776 = vmatprep.subr.bf16.mxu0 %v4427_v45  ;;  %3798 = vmatprep.subr.bf16.mxu1 %v4428_v46 }
 0x25f   :  { %3777 = vmatpush3.bf16.msra.mxu0 %v4429_v48  ;;  %3799 = vmatpush3.bf16.msra.mxu1 %v4430_v49 }
 0x260   :  { %3778 = vmatprep.subr.bf16.mxu0 %v4431_v50  ;;  %3800 = vmatprep.subr.bf16.mxu1 %v4432_v51 }
 0x263   :  { %3779 = vmatpush3.bf16.msra.mxu0 %v4433_v52  ;;  %3801 = vmatpush3.bf16.msra.mxu1 %v4434_v53 }
 0x264   :  { %3780 = vmatprep.subr.bf16.mxu0 %v4435_v54  ;;  %3802 = vmatprep.subr.bf16.mxu1 %v4436_v55 }
 0x267   :  { %3781 = vmatpush3.bf16.msra.mxu0 %v4437_v56  ;;  %3803 = vmatpush3.bf16.msra.mxu1 %v4438_v57 }
 0x268   :  { %3782 = vmatprep.subr.bf16.mxu0 %v4439_v58  ;;  %3804 = vmatprep.subr.bf16.mxu1 %v4440_v60 }
 0x26b   :  { %3783 = vmatpush3.bf16.msra.mxu0 %v4441_v61  ;;  %3805 = vmatpush3.bf16.msra.mxu1 %v4442_v62 }
 0x321   :  { %v2891_v3 = vpop.f32.mrb[16].mxu0  ;;  %v2973_v4 = vpop.f32.mrb[16].mxu1 }
 0x322   :  { %v3812_v5 = vadd.f32 %v2891_v3, %v2159_v0  ;;  %v3814_v6 = vadd.f32 %v2973_v4, %v2167_v1  ;;  %v2893_v7 = vpop.f32.mrb[17].mxu0  ;;  %v2975_v10 = vpop.f32.mrb[17].mxu1 }
 0x323   :  { %v3813_v11 = vadd.f32 %v2893_v7, %v2163_v2  ;;  %v3815_v12 = vadd.f32 %v2975_v10, %v2171_v47  ;;  %v2895_v13 = vpop.f32.mrb[18].mxu0  ;;  %v2977_v22 = vpop.f32.mrb[18].mxu1 }
 0x324   :  { %v2980_v40 = vmax.f32 %v3812_v5, 0.0  ;;  %v2982_v14 = vmax.f32 %v3814_v6, 0.0  ;;  %v2896_v15 = vpop.f32.mrb[19].mxu0  ;;  %v2978_v59 = vpop.f32.mrb[19].mxu1 }
 0x325   :  { %v2981_v16 = vmax.f32 %v3813_v11, 0.0  ;;  %v2983_v17 = vmax.f32 %v3815_v12, 0.0 }
 0x326   :  { %v2984_v39 = vpack.c.bf16 %v2980_v40, %v2980_v40  ;;  %v2986_v44 = vpack.c.bf16 %v2982_v14, %v2982_v14 }
 0x327   :  { %v2985_v42 = vpack.c.bf16 %v2981_v16, %v2981_v16  ;;  %v2987_v20 = vpack.c.bf16 %v2983_v17, %v2983_v17 }
 0x329   :  { %3283 = vmatprep.mubr.bf16.mxu0 %v2985_v42  ;;  %3323 = vmatprep.mubr.bf16.mxu1 %v2987_v20 }
 0x32a   :  { %3284 = vmatmul.mubr.bf16.vlgmr.msra.gmra.mrb[20].mxu0 %v2984_v39  ;;  %3324 = vmatmul.mubr.bf16.vlgmr.msra.gmra.mrb[20].mxu1 %v2986_v44 }
 0x3fd   :  { %v3784_v35 = vpop.f32.mrb[20].mxu0  ;;  %v3806_v21 = vpop.f32.mrb[20].mxu1 }
 0x3fe   :  { %v3785_v24 = vpop.f32.mrb[21].mxu0  ;;  %v3807_v25 = vpop.f32.mrb[21].mxu1 }
 0x3ff   :  { %v3786_v26 = vadd.f32 %v3785_v24, %v3784_v35  ;;  %v3808_v8 = vadd.f32 %v3807_v25, %v3806_v21  ;;  %v3787_v9 = vpop.f32.mrb[22].mxu0  ;;  %v3809_v27 = vpop.f32.mrb[22].mxu1 }
 0x400   :  { %v3788_v28 = vpop.f32.mrb[23].mxu0  ;;  %v3810_v29 = vpop.f32.mrb[23].mxu1 }
 0x401   :  { %v3286_v30 = vadd.f32 %v3786_v26, %v3735_v41 }
 0x403   :  { %v3326_v31 = vadd.f32 %v3808_v8, %v3286_v30 }
 0x405   :  { %3332 = vst.msk [vmem:[#allocation13] sm:$0xff] %vm3331_vm0, %v3326_v31 }
 0x406   :  { %4586 = shalt.err (!%p4583_p10)
}
 0x407   :  { %s4587_s23 = scalar_lea.hbm %s4847_s9, 128 }
 0x408   :  { %p4588_p11 = scmp.ne.s32.totalorder %s4847_s9, %s4587_s23  ;;  %p4591_p12 = scmp.lt.u32.totalorder %s4587_s23, %s4847_s9 }
 0x40a   :  { %p4593_p13 = pnand %p4591_p12, %p4588_p11 }
 0x40c   :  { %4596 = shalt.err (!%p4593_p13)
}
 0x40d   :  { %3342 = dma.vmem_to_hbm [thread:$0]  %s3340_s19, 128, %s4847_s9, [#allocation4]  }
 0x40e   :  { %4605 = dma.done.wait [#allocation4], 128  }
 0x40f   :  { %4606 = vsyncadd [#allocation4], 4294967168 }
 0x410   :  { %3346 = vsyncpa [#allocation3], 1 }
 0x411   :  { %3347 = vsyncpa [#allocation6], 1 }
 0x412   :  { %3348 = vsyncpa [#allocation9], 1 }
 0x413   :  { %3349 = vsyncpa [#allocation12], 1 }
 0x414   :  { %3350 = vsyncpa [#allocation4], 1 }

</bundles_post_ra>
